<compile_context>
chip_gen: v7x
topology: tpu7x:2x2x1
jax: 0.10.0
libtpu: 0.0.40
codegen_flags: <defaults>
</compile_context>

<pallas_src>
import functools

import numpy as np
import jax
import jax.numpy as jnp
from jax import lax
from jax.experimental import pallas as pl
from jax.experimental.pallas import tpu as pltpu


def _round_up(x, m):
    return (x + m - 1) // m * m


# --------------------------------------------------------------------------
# Fused kernel: hoisted input projection + fused fwd/bwd LSTM recurrence +
# lane-dense word-hidden output + vocab-tiled online-logsumexp NLL loss.
# --------------------------------------------------------------------------
def _char_lm_kernel(xx_ref, len_ref, wih_ref, whh_ref, b_ref, wlm_ref,
                    label_ref, wgt_ref,
                    h_out_ref, loss_ref,
                    gx_scr, h_scr, c_scr,
                    *, t_steps, v_real, v_tile):
    Wt, Hp2 = h_scr.shape          # (word tile, 2*Hp): [fwd hidden | bwd hidden]
    Hp = Hp2 // 2
    G = 4 * Hp2                    # 8*Hp gate columns
    mm_dtype = whh_ref.dtype       # bf16 (default) or f32 matmul operands

    # ---- hoisted input projection: per timestep, covers BOTH directions' gate
    # columns (no duplicated time-reversed input).  Accumulation in f32.
    def proj(t):
        off = t * Wt
        if not isinstance(t, int):
            off = pl.multiple_of(off, Wt)
        gx_scr[pl.ds(off, Wt), :] = (
            jnp.dot(xx_ref[t], wih_ref[...], preferred_element_type=jnp.float32)
            + b_ref[...])

    # ---- init state ----
    h_scr[...] = jnp.zeros_like(h_scr)
    c_scr[...] = jnp.zeros_like(c_scr)

    lenv = len_ref[...]                                            # (Wt, 1) int32
    col2 = lax.broadcasted_iota(jnp.int32, (Wt, Hp2), 1)
    is_fwd2 = col2 < Hp                                            # (Wt, 2Hp)
    col8 = lax.broadcasted_iota(jnp.int32, (Wt, G), 1)
    is_fwd8 = (col8 % Hp2) < Hp                                    # (Wt, 8Hp)

    # ---- fused fwd+bwd recurrence: one step processes char s (fwd) and char
    # T-1-s (bwd); state columns [0:Hp] fwd, [Hp:2Hp] bwd; W_hh is block-diagonal.
    # TODO(synk): at Hp >= 256, split the block-diagonal W_hh matmul into two
    # per-direction (Wt,Hp)@(Hp,4Hp) matmuls to avoid multiplying zero blocks.
    def step(s):
        off_f = s * Wt
        off_b = (t_steps - 1 - s) * Wt
        if not isinstance(s, int):
            off_f = pl.multiple_of(off_f, Wt)
            off_b = pl.multiple_of(off_b, Wt)
        gx_f = gx_scr[pl.ds(off_f, Wt), :]
        gx_b = gx_scr[pl.ds(off_b, Wt), :]
        gate_x = jnp.where(is_fwd8, gx_f, gx_b)                    # (Wt, 8Hp) f32
        gates = gate_x + jnp.dot(h_scr[...].astype(mm_dtype), whh_ref[...],
                                 preferred_element_type=jnp.float32)
        # gate layout: [i_f i_b | f_f f_b | g_f g_b | o_f o_b]; every slice below
        # is 2Hp wide and starts at a 128-lane-aligned column.
        i_g = jax.nn.sigmoid(gates[:, 0 * Hp2:1 * Hp2])
        f_g = jax.nn.sigmoid(gates[:, 1 * Hp2:2 * Hp2])
        g_g = jnp.tanh(gates[:, 2 * Hp2:3 * Hp2])
        o_g = jax.nn.sigmoid(gates[:, 3 * Hp2:4 * Hp2])
        c_new = f_g * c_scr[...] + i_g * g_g
        h_new = o_g * jnp.tanh(c_new)
        t_eff = jnp.where(is_fwd2, s, t_steps - 1 - s)
        keep = t_eff < lenv
        c_scr[...] = jnp.where(keep, c_new, c_scr[...])
        h_scr[...] = jnp.where(keep, h_new, h_scr[...])

    if t_steps <= 8:
        for t in range(t_steps):
            proj(t)
        for s in range(t_steps):
            step(s)
    else:
        def proj_body(t, carry):
            proj(t)
            return carry

        def step_body(s, carry):
            step(s)
            return carry
        lax.fori_loop(0, t_steps, proj_body, 0, unroll=2)
        lax.fori_loop(0, t_steps, step_body, 0, unroll=2)

    h = h_scr[...]                                                 # (Wt, 2Hp) f32
    # lane-dense (2Hp multiple of 128) word-major output; wrapper strips the pad
    # columns and re-pads to sentences with a cheap gather/scatter.
    h_out_ref[...] = h.astype(h_out_ref.dtype)

    # ---- LM head: vocab tiled with online logsumexp; logp is never materialized.
    # TODO(synk): for very large V, stream W_lm vocab tiles from HBM (manual DMA)
    # instead of keeping the whole (2Hp, Vp) matrix VMEM-resident.
    h_mm = h.astype(wlm_ref.dtype)
    label = label_ref[...]                                         # (Wt, 1) int32
    Vp = wlm_ref.shape[1]
    m_run = jnp.full((Wt, 1), -1e30, jnp.float32)
    l_run = jnp.zeros((Wt, 1), jnp.float32)
    picked = jnp.zeros((Wt, 1), jnp.float32)
    for vt in range(Vp // v_tile):
        logit = jnp.dot(h_mm, wlm_ref[:, vt * v_tile:(vt + 1) * v_tile],
                        preferred_element_type=jnp.float32)        # (Wt, Vt)
        vcol = lax.broadcasted_iota(jnp.int32, logit.shape, 1) + vt * v_tile
        logit = jnp.where(vcol < v_real, logit, -1e30)             # mask pad vocab
        m_new = jnp.maximum(m_run, jnp.max(logit, axis=-1, keepdims=True))
        l_run = (l_run * jnp.exp(m_run - m_new)
                 + jnp.sum(jnp.exp(logit - m_new), axis=-1, keepdims=True))
        m_run = m_new
        picked = picked + jnp.sum(jnp.where(vcol == label, logit, 0.0),
                                  axis=-1, keepdims=True)
    lse = jnp.log(l_run) + m_run
    # per-word weights encode 1/(l_b * B) for valid words, 0 for padding rows.
    nll = (lse - picked) * wgt_ref[...]                            # (Wt, 1)
    loss_ref[...] = jnp.zeros(loss_ref.shape, jnp.float32) + jnp.sum(nll)


# --------------------------------------------------------------------------
# Wrapper: parameter packing, embedding gather, static ragged bookkeeping,
# sentence re-padding and loss reduction.
# --------------------------------------------------------------------------
class CharLangModelPallas:
    def __init__(self, dim_char, dim_hidden_char, n_vocab_char, n_vocab, key,
                 use_bf16_matmul=True, word_tile=256):
        # word_tile: 128 on v5e (fills the 4x128 MXU, fits 16 MiB scoped VMEM),
        #            256 on v6e/v7x.  Clamped to the padded word count at runtime.
        D, H = dim_char, dim_hidden_char
        self.D, self.H, self.V = D, H, n_vocab
        self.Hp = _round_up(H, 64)          # 2*Hp multiple of 128 -> aligned gate slices
        self.Vp = _round_up(n_vocab, 128)
        self.word_tile = _round_up(max(word_tile, 8), 8)
        self.use_bf16 = bool(use_bf16_matmul)
        self.mm_dtype = jnp.bfloat16 if self.use_bf16 else jnp.float32
        Hp, Vp = self.Hp, self.Vp

        # vocab tile for the in-kernel online logsumexp
        self.v_tile = Vp
        for cand in (512, 256, 128):
            if Vp % cand == 0:
                self.v_tile = cand
                break

        ks = jax.random.split(key, 12)
        scale = 0.1

        def lin(k, shp):
            return jax.random.normal(k, shp, jnp.float32) * scale

        self.embed_char = lin(ks[0], (n_vocab_char, D))
        # PyTorch-layout LSTM params, gate order (i, f, g, o)
        wih_f = lin(ks[1], (4 * H, D)); whh_f = lin(ks[2], (4 * H, H))
        b_f = lin(ks[3], (4 * H,)) + lin(ks[4], (4 * H,))    # b_ih + b_hh
        wih_b = lin(ks[5], (4 * H, D)); whh_b = lin(ks[6], (4 * H, H))
        b_b = lin(ks[7], (4 * H,)) + lin(ks[8], (4 * H,))
        w_lm = lin(ks[9], (n_vocab, 2 * H))                  # Linear(2H->V, no bias)

        # Combined-gate layout (8*Hp cols): [i_f i_b | f_f f_b | g_f g_b | o_f o_b]
        wih_blk = jnp.zeros((D, 8 * Hp), jnp.float32)        # same x feeds both dirs
        whh_blk = jnp.zeros((2 * Hp, 8 * Hp), jnp.float32)   # rows: [h_fwd | h_bwd]
        b_blk = jnp.zeros((1, 8 * Hp), jnp.float32)
        for g in range(4):
            cf = (2 * g) * Hp
            cb = (2 * g + 1) * Hp
            wih_blk = wih_blk.at[:, cf:cf + H].set(wih_f[g * H:(g + 1) * H, :].T)
            wih_blk = wih_blk.at[:, cb:cb + H].set(wih_b[g * H:(g + 1) * H, :].T)
            whh_blk = whh_blk.at[0:H, cf:cf + H].set(whh_f[g * H:(g + 1) * H, :].T)
            whh_blk = whh_blk.at[Hp:Hp + H, cb:cb + H].set(whh_b[g * H:(g + 1) * H, :].T)
            b_blk = b_blk.at[0, cf:cf + H].set(b_f[g * H:(g + 1) * H])
            b_blk = b_blk.at[0, cb:cb + H].set(b_b[g * H:(g + 1) * H])
        self.wih_blk = wih_blk.astype(self.mm_dtype)
        self.whh_blk = whh_blk.astype(self.mm_dtype)
        self.b_blk = b_blk                                     # bias stays f32

        wlm_blk = jnp.zeros((2 * Hp, Vp), jnp.float32)
        wlm_blk = wlm_blk.at[0:H, 0:n_vocab].set(w_lm[:, 0:H].T)
        wlm_blk = wlm_blk.at[Hp:Hp + H, 0:n_vocab].set(w_lm[:, H:2 * H].T)
        self.wlm_blk = wlm_blk.astype(self.mm_dtype)

    def __call__(self, input_char, length_word, length_sen, label_lm):
        D, H, Hp, V, Vp = self.D, self.H, self.Hp, self.V, self.Vp
        W, T = input_char.shape
        B, S = label_lm.shape
        assert sum(length_sen) == W
        # Reference would NaN (0/0) on an empty sentence; we refuse it instead.
        assert all(l > 0 for l in length_sen), "zero-length sentence"
        # Reference packed-sequence / nll_loss would error on these; check up front.
        lw = jnp.asarray(length_word, jnp.int32)
        assert bool(jnp.all((lw >= 1) & (lw <= T))), "length_word out of range"
        assert bool(jnp.all((label_lm >= 0) & (label_lm < V))), "label out of vocab"

        # word-axis tiling
        Wt = min(self.word_tile, _round_up(W, 8))
        Wp = _round_up(W, Wt)
        n_wt = Wp // Wt

        # glue: embedding gather; dropout(p=0) = identity
        e_char = self.embed_char[input_char]                  # (W, T, D)
        e_tm = jnp.transpose(e_char, (1, 0, 2))               # (T, W, D)
        xx = jnp.pad(e_tm, ((0, 0), (0, Wp - W), (0, 0))).astype(self.mm_dtype)

        len_pad = jnp.zeros((Wp, 1), jnp.int32).at[:W, 0].set(lw)

        # Static word -> (sentence, position) bookkeeping from length_sen.
        n_idx = []
        wgt = np.zeros((Wp, 1), np.float32)
        w = 0
        for b, l in enumerate(length_sen):
            for s_pos in range(l):
                n_idx.append(b * S + s_pos)
                wgt[w, 0] = 1.0 / (float(l) * float(B))
                w += 1
        assert w == W
        n_idx = jnp.asarray(n_idx, jnp.int32)
        label_pad = jnp.zeros((Wp, 1), jnp.int32).at[:W, 0].set(
            label_lm.reshape(-1)[n_idx].astype(jnp.int32))
        wgt_j = jnp.asarray(wgt)

        # explicit VMEM budget (per word tile): xx tile (double-buffered), resident
        # weights, gx/h/c scratch, outputs.  Size the word tile so this fits
        # ~96 MiB on v5e/v6e and ~48 MiB on v7x.
        dsz = 2 if self.use_bf16 else 4
        tile_bytes = (2 * T * Wt * D * dsz                      # xx tile x2 buffers
                      + (D + 2 * Hp) * 8 * Hp * dsz             # W_ih + W_hh (resident)
                      + 2 * Hp * Vp * dsz + 8 * Hp * 4          # W_lm + bias
                      + T * Wt * 8 * Hp * 4                     # gx scratch (f32)
                      + 2 * Wt * 2 * Hp * 4                     # h / c state
                      + 2 * Wt * 2 * Hp * 4 + 2 * 8 * 128 * 4   # outputs x2 buffers
                      + 2 * 3 * Wt * 4)                         # len/label/wgt tiles
        vmem_limit = int(min(max(2 * tile_bytes, 16 << 20), 100 << 20))

        kernel = functools.partial(_char_lm_kernel, t_steps=T, v_real=V,
                                   v_tile=self.v_tile)
        h_out, loss_part = pl.pallas_call(
            kernel,
            out_shape=(jax.ShapeDtypeStruct((Wp, 2 * Hp), jnp.float32),
                       jax.ShapeDtypeStruct((n_wt, 8, 128), jnp.float32)),
            grid=(n_wt,),
            in_specs=[
                pl.BlockSpec((T, Wt, D), lambda w: (0, w, 0)),          # xx tile
                pl.BlockSpec((Wt, 1), lambda w: (w, 0)),                # lengths
                pl.BlockSpec(self.wih_blk.shape, lambda w: (0, 0)),     # resident
                pl.BlockSpec(self.whh_blk.shape, lambda w: (0, 0)),     # resident
                pl.BlockSpec(self.b_blk.shape, lambda w: (0, 0)),       # resident
                pl.BlockSpec(self.wlm_blk.shape, lambda w: (0, 0)),     # resident
                pl.BlockSpec((Wt, 1), lambda w: (w, 0)),                # labels
                pl.BlockSpec((Wt, 1), lambda w: (w, 0)),                # weights
            ],
            out_specs=(pl.BlockSpec((Wt, 2 * Hp), lambda w: (w, 0)),    # lane-dense h
                       pl.BlockSpec((1, 8, 128), lambda w: (w, 0, 0))), # per-tile loss
            scratch_shapes=[pltpu.VMEM((T * Wt, 8 * Hp), jnp.float32),  # hoisted gx
                            pltpu.VMEM((Wt, 2 * Hp), jnp.float32),      # h state
                            pltpu.VMEM((Wt, 2 * Hp), jnp.float32)],     # c state
            compiler_params=pltpu.CompilerParams(
                dimension_semantics=("parallel",),      # shards word tiles on v7x TCs
                vmem_limit_bytes=vmem_limit),
        )(xx, len_pad, self.wih_blk, self.whh_blk, self.b_blk, self.wlm_blk,
          label_pad, wgt_j)

        # wrapper-side vectors2padsequence: strip pad hidden columns (lane-dense
        # kernel output) and scatter word rows into (B, S, 2H).  Cheap XLA gather.
        v_word = jnp.concatenate([h_out[:W, 0:H], h_out[:W, Hp:Hp + H]], axis=-1)
        emb = (jnp.zeros((B * S, 2 * H), jnp.float32).at[n_idx].set(v_word)
               .reshape(B, S, 2 * H))
        loss = jnp.sum(loss_part[:, 0, 0])
        return emb, loss


if __name__ == "__main__":
    key = jax.random.PRNGKey(0)
    k_model, k_chars, k_labels = jax.random.split(key, 3)

    dim_char, dim_hidden_char = 16, 16
    n_vocab_char, n_vocab = 20, 24
    B, S, T_char = 2, 4, 6
    length_sen = [4, 3]                       # words per sentence (static python list)
    W = sum(length_sen)                       # total words = 7

    input_char = jax.random.randint(k_chars, (W, T_char), 0, n_vocab_char, jnp.int32)
    length_word = jnp.array([6, 3, 4, 2, 5, 6, 1], jnp.int32)     # chars per word
    label_lm = jax.random.randint(k_labels, (B, S), 0, n_vocab, jnp.int32)

    model = CharLangModelPallas(dim_char, dim_hidden_char, n_vocab_char, n_vocab,
                                k_model, use_bf16_matmul=True)
    emb_word, loss = model(input_char, length_word, length_sen, label_lm)
    jax.block_until_ready(emb_word)
    jax.block_until_ready(loss)
    assert emb_word.shape == (B, S, 2 * dim_hidden_char)
    assert bool(jnp.isfinite(loss))
    print("KERNEL_OK")
</pallas_src>

<mosaic_0001>
module attributes {stable_mosaic.version = 11 : i64} {
  func.func @_char_lm_kernel(%arg0: i32, %arg1: memref<6x8x16xbf16, #tpu.memory_space<vmem>>, %arg2: memref<8x1xi32, #tpu.memory_space<vmem>>, %arg3: memref<16x512xbf16, #tpu.memory_space<vmem>>, %arg4: memref<128x512xbf16, #tpu.memory_space<vmem>>, %arg5: memref<1x512xf32, #tpu.memory_space<vmem>>, %arg6: memref<128x128xbf16, #tpu.memory_space<vmem>>, %arg7: memref<8x1xi32, #tpu.memory_space<vmem>>, %arg8: memref<8x1xf32, #tpu.memory_space<vmem>>, %arg9: memref<8x128xf32, #tpu.memory_space<vmem>>, %arg10: memref<1x8x128xf32, #tpu.memory_space<vmem>>, %arg11: memref<48x512xf32, #tpu.memory_space<vmem>>, %arg12: memref<8x128xf32, #tpu.memory_space<vmem>>, %arg13: memref<8x128xf32, #tpu.memory_space<vmem>>) attributes {dimension_semantics = [#tpu.dimension_semantics<parallel>], iteration_bounds = array<i64: 1>, scalar_prefetch = 0 : i64, scratch_operands = 3 : i64, tpu.core_type = #tpu.core_type<tc>, window_params = [{transform_indices = @transform_0, window_bounds = array<i64: 6, 8, 16>}, {transform_indices = @transform_1, window_bounds = array<i64: 8, 1>}, {pipeline_mode = #tpu.pipeline_mode<synchronous>, transform_indices = @transform_2, window_bounds = array<i64: 16, 512>}, {pipeline_mode = #tpu.pipeline_mode<synchronous>, transform_indices = @transform_3, window_bounds = array<i64: 128, 512>}, {pipeline_mode = #tpu.pipeline_mode<synchronous>, transform_indices = @transform_4, window_bounds = array<i64: 1, 512>}, {pipeline_mode = #tpu.pipeline_mode<synchronous>, transform_indices = @transform_5, window_bounds = array<i64: 128, 128>}, {transform_indices = @transform_6, window_bounds = array<i64: 8, 1>}, {transform_indices = @transform_7, window_bounds = array<i64: 8, 1>}, {transform_indices = @transform_8, window_bounds = array<i64: 8, 128>}, {transform_indices = @transform_9, window_bounds = array<i64: 1, 8, 128>}]} {
    %cst = arith.constant 0.000000e+00 : f32
    %0 = vector.broadcast %cst : f32 to vector<8x128xf32>
    %c0 = arith.constant 0 : index
    %c0_0 = arith.constant 0 : index
    %1 = vector.load %arg12[%c0, %c0_0] : memref<8x128xf32, #tpu.memory_space<vmem>>, vector<8x128xf32>
    tpu.vector_store %arg12[%c0, %c0_0], %0 {strides = array<i32>} : memref<8x128xf32, #tpu.memory_space<vmem>>, vector<8x128xf32>,
    %cst_1 = arith.constant 0.000000e+00 : f32
    %2 = vector.broadcast %cst_1 : f32 to vector<8x128xf32>
    %c0_2 = arith.constant 0 : index
    %c0_3 = arith.constant 0 : index
    %3 = vector.load %arg13[%c0_2, %c0_3] : memref<8x128xf32, #tpu.memory_space<vmem>>, vector<8x128xf32>
    tpu.vector_store %arg13[%c0_2, %c0_3], %2 {strides = array<i32>} : memref<8x128xf32, #tpu.memory_space<vmem>>, vector<8x128xf32>,
    %c0_4 = arith.constant 0 : index
    %c0_5 = arith.constant 0 : index
    %4 = vector.load %arg2[%c0_4, %c0_5] : memref<8x1xi32, #tpu.memory_space<vmem>>, vector<8x1xi32>
    %5 = tpu.iota {dimensions = array<i32: 1>} : vector<8x128xi32>
    %c64_i32 = arith.constant 64 : i32
    %6 = vector.broadcast %c64_i32 : i32 to vector<8x128xi32>
    %7 = arith.cmpi slt, %5, %6 : vector<8x128xi32>
    %8 = tpu.iota {dimensions = array<i32: 1>} : vector<8x512xi32>
    %c128_i32 = arith.constant 128 : i32
    %c0_i32 = arith.constant 0 : i32
    %9 = arith.cmpi eq, %c128_i32, %c0_i32 : i32
    %c1_i32 = arith.constant 1 : i32
    %10 = arith.select %9, %c1_i32, %c128_i32 : i32
    %11 = vector.broadcast %10 : i32 to vector<8x512xi32>
    %12 = arith.remsi %8, %11 : vector<8x512xi32>
    %c0_i32_6 = arith.constant 0 : i32
    %13 = vector.broadcast %c0_i32_6 : i32 to vector<8x512xi32>
    %14 = arith.cmpi ne, %12, %13 : vector<8x512xi32>
    %c0_i32_7 = arith.constant 0 : i32
    %15 = vector.broadcast %c0_i32_7 : i32 to vector<8x512xi32>
    %16 = arith.cmpi slt, %12, %15 : vector<8x512xi32>
    %c0_i32_8 = arith.constant 0 : i32
    %17 = arith.cmpi slt, %10, %c0_i32_8 : i32
    %18 = vector.broadcast %17 : i1 to vector<8x512xi1>
    %19 = vector.broadcast %18 : vector<8x512xi1> to vector<8x512xi1>
    %20 = arith.xori %16, %19 : vector<8x512xi1>
    %21 = arith.andi %20, %14 : vector<8x512xi1>
    %22 = vector.broadcast %10 : i32 to vector<8x512xi32>
    %23 = arith.addi %12, %22 : vector<8x512xi32>
    %24 = arith.select %21, %23, %12 : vector<8x512xi1>, vector<8x512xi32>
    %c64_i32_9 = arith.constant 64 : i32
    %25 = vector.broadcast %c64_i32_9 : i32 to vector<8x512xi32>
    %26 = arith.cmpi slt, %24, %25 : vector<8x512xi32>
    %c0_10 = arith.constant 0 : index
    %c0_11 = arith.constant 0 : index
    %c0_12 = arith.constant 0 : index
    %27 = vector.load %arg1[%c0_10, %c0_11, %c0_12] : memref<6x8x16xbf16, #tpu.memory_space<vmem>>, vector<1x8x16xbf16>
    %28 = vector.shape_cast %27 : vector<1x8x16xbf16> to vector<8x16xbf16>
    %c0_13 = arith.constant 0 : index
    %c0_14 = arith.constant 0 : index
    %29 = vector.load %arg3[%c0_13, %c0_14] : memref<16x512xbf16, #tpu.memory_space<vmem>>, vector<16x512xbf16>
    %cst_15 = arith.constant dense<0.000000e+00> : vector<8x512xf32>
    %30 = tpu.matmul %28, %29, %cst_15 {dimension_numbers = #tpu.dot_dimension_numbers<[1], [0], [0], [1], [0, 0, 1, 1], [], []>} : vector<8x16xbf16>, vector<16x512xbf16>, vector<8x512xf32> -> vector<8x512xf32>
    %c0_16 = arith.constant 0 : index
    %c0_17 = arith.constant 0 : index
    %31 = vector.load %arg5[%c0_16, %c0_17] : memref<1x512xf32, #tpu.memory_space<vmem>>, vector<1x512xf32>
    %32 = vector.broadcast %31 : vector<1x512xf32> to vector<8x512xf32>
    %33 = arith.addf %30, %32 : vector<8x512xf32>
    %c0_18 = arith.constant 0 : index
    %c0_19 = arith.constant 0 : index
    %34 = vector.load %arg11[%c0_18, %c0_19] : memref<48x512xf32, #tpu.memory_space<vmem>>, vector<8x512xf32>
    tpu.vector_store %arg11[%c0_18, %c0_19], %33 {strides = array<i32>} : memref<48x512xf32, #tpu.memory_space<vmem>>, vector<8x512xf32>,
    %c1 = arith.constant 1 : index
    %c0_20 = arith.constant 0 : index
    %c0_21 = arith.constant 0 : index
    %35 = vector.load %arg1[%c1, %c0_20, %c0_21] : memref<6x8x16xbf16, #tpu.memory_space<vmem>>, vector<1x8x16xbf16>
    %36 = vector.shape_cast %35 : vector<1x8x16xbf16> to vector<8x16xbf16>
    %c0_22 = arith.constant 0 : index
    %c0_23 = arith.constant 0 : index
    %37 = vector.load %arg3[%c0_22, %c0_23] : memref<16x512xbf16, #tpu.memory_space<vmem>>, vector<16x512xbf16>
    %cst_24 = arith.constant dense<0.000000e+00> : vector<8x512xf32>
    %38 = tpu.matmul %36, %37, %cst_24 {dimension_numbers = #tpu.dot_dimension_numbers<[1], [0], [0], [1], [0, 0, 1, 1], [], []>} : vector<8x16xbf16>, vector<16x512xbf16>, vector<8x512xf32> -> vector<8x512xf32>
    %c0_25 = arith.constant 0 : index
    %c0_26 = arith.constant 0 : index
    %39 = vector.load %arg5[%c0_25, %c0_26] : memref<1x512xf32, #tpu.memory_space<vmem>>, vector<1x512xf32>
    %40 = vector.broadcast %39 : vector<1x512xf32> to vector<8x512xf32>
    %41 = arith.addf %38, %40 : vector<8x512xf32>
    %c8 = arith.constant 8 : index
    %c0_27 = arith.constant 0 : index
    %42 = vector.load %arg11[%c8, %c0_27] : memref<48x512xf32, #tpu.memory_space<vmem>>, vector<8x512xf32>
    tpu.vector_store %arg11[%c8, %c0_27], %41 {strides = array<i32>} : memref<48x512xf32, #tpu.memory_space<vmem>>, vector<8x512xf32>,
    %c2 = arith.constant 2 : index
    %c0_28 = arith.constant 0 : index
    %c0_29 = arith.constant 0 : index
    %43 = vector.load %arg1[%c2, %c0_28, %c0_29] : memref<6x8x16xbf16, #tpu.memory_space<vmem>>, vector<1x8x16xbf16>
    %44 = vector.shape_cast %43 : vector<1x8x16xbf16> to vector<8x16xbf16>
    %c0_30 = arith.constant 0 : index
    %c0_31 = arith.constant 0 : index
    %45 = vector.load %arg3[%c0_30, %c0_31] : memref<16x512xbf16, #tpu.memory_space<vmem>>, vector<16x512xbf16>
    %cst_32 = arith.constant dense<0.000000e+00> : vector<8x512xf32>
    %46 = tpu.matmul %44, %45, %cst_32 {dimension_numbers = #tpu.dot_dimension_numbers<[1], [0], [0], [1], [0, 0, 1, 1], [], []>} : vector<8x16xbf16>, vector<16x512xbf16>, vector<8x512xf32> -> vector<8x512xf32>
    %c0_33 = arith.constant 0 : index
    %c0_34 = arith.constant 0 : index
    %47 = vector.load %arg5[%c0_33, %c0_34] : memref<1x512xf32, #tpu.memory_space<vmem>>, vector<1x512xf32>
    %48 = vector.broadcast %47 : vector<1x512xf32> to vector<8x512xf32>
    %49 = arith.addf %46, %48 : vector<8x512xf32>
    %c16 = arith.constant 16 : index
    %c0_35 = arith.constant 0 : index
    %50 = vector.load %arg11[%c16, %c0_35] : memref<48x512xf32, #tpu.memory_space<vmem>>, vector<8x512xf32>
    tpu.vector_store %arg11[%c16, %c0_35], %49 {strides = array<i32>} : memref<48x512xf32, #tpu.memory_space<vmem>>, vector<8x512xf32>,
    %c3 = arith.constant 3 : index
    %c0_36 = arith.constant 0 : index
    %c0_37 = arith.constant 0 : index
    %51 = vector.load %arg1[%c3, %c0_36, %c0_37] : memref<6x8x16xbf16, #tpu.memory_space<vmem>>, vector<1x8x16xbf16>
    %52 = vector.shape_cast %51 : vector<1x8x16xbf16> to vector<8x16xbf16>
    %c0_38 = arith.constant 0 : index
    %c0_39 = arith.constant 0 : index
    %53 = vector.load %arg3[%c0_38, %c0_39] : memref<16x512xbf16, #tpu.memory_space<vmem>>, vector<16x512xbf16>
    %cst_40 = arith.constant dense<0.000000e+00> : vector<8x512xf32>
    %54 = tpu.matmul %52, %53, %cst_40 {dimension_numbers = #tpu.dot_dimension_numbers<[1], [0], [0], [1], [0, 0, 1, 1], [], []>} : vector<8x16xbf16>, vector<16x512xbf16>, vector<8x512xf32> -> vector<8x512xf32>
    %c0_41 = arith.constant 0 : index
    %c0_42 = arith.constant 0 : index
    %55 = vector.load %arg5[%c0_41, %c0_42] : memref<1x512xf32, #tpu.memory_space<vmem>>, vector<1x512xf32>
    %56 = vector.broadcast %55 : vector<1x512xf32> to vector<8x512xf32>
    %57 = arith.addf %54, %56 : vector<8x512xf32>
    %c24 = arith.constant 24 : index
    %c0_43 = arith.constant 0 : index
    %58 = vector.load %arg11[%c24, %c0_43] : memref<48x512xf32, #tpu.memory_space<vmem>>, vector<8x512xf32>
    tpu.vector_store %arg11[%c24, %c0_43], %57 {strides = array<i32>} : memref<48x512xf32, #tpu.memory_space<vmem>>, vector<8x512xf32>,
    %c4 = arith.constant 4 : index
    %c0_44 = arith.constant 0 : index
    %c0_45 = arith.constant 0 : index
    %59 = vector.load %arg1[%c4, %c0_44, %c0_45] : memref<6x8x16xbf16, #tpu.memory_space<vmem>>, vector<1x8x16xbf16>
    %60 = vector.shape_cast %59 : vector<1x8x16xbf16> to vector<8x16xbf16>
    %c0_46 = arith.constant 0 : index
    %c0_47 = arith.constant 0 : index
    %61 = vector.load %arg3[%c0_46, %c0_47] : memref<16x512xbf16, #tpu.memory_space<vmem>>, vector<16x512xbf16>
    %cst_48 = arith.constant dense<0.000000e+00> : vector<8x512xf32>
    %62 = tpu.matmul %60, %61, %cst_48 {dimension_numbers = #tpu.dot_dimension_numbers<[1], [0], [0], [1], [0, 0, 1, 1], [], []>} : vector<8x16xbf16>, vector<16x512xbf16>, vector<8x512xf32> -> vector<8x512xf32>
    %c0_49 = arith.constant 0 : index
    %c0_50 = arith.constant 0 : index
    %63 = vector.load %arg5[%c0_49, %c0_50] : memref<1x512xf32, #tpu.memory_space<vmem>>, vector<1x512xf32>
    %64 = vector.broadcast %63 : vector<1x512xf32> to vector<8x512xf32>
    %65 = arith.addf %62, %64 : vector<8x512xf32>
    %c32 = arith.constant 32 : index
    %c0_51 = arith.constant 0 : index
    %66 = vector.load %arg11[%c32, %c0_51] : memref<48x512xf32, #tpu.memory_space<vmem>>, vector<8x512xf32>
    tpu.vector_store %arg11[%c32, %c0_51], %65 {strides = array<i32>} : memref<48x512xf32, #tpu.memory_space<vmem>>, vector<8x512xf32>,
    %c5 = arith.constant 5 : index
    %c0_52 = arith.constant 0 : index
    %c0_53 = arith.constant 0 : index
    %67 = vector.load %arg1[%c5, %c0_52, %c0_53] : memref<6x8x16xbf16, #tpu.memory_space<vmem>>, vector<1x8x16xbf16>
    %68 = vector.shape_cast %67 : vector<1x8x16xbf16> to vector<8x16xbf16>
    %c0_54 = arith.constant 0 : index
    %c0_55 = arith.constant 0 : index
    %69 = vector.load %arg3[%c0_54, %c0_55] : memref<16x512xbf16, #tpu.memory_space<vmem>>, vector<16x512xbf16>
    %cst_56 = arith.constant dense<0.000000e+00> : vector<8x512xf32>
    %70 = tpu.matmul %68, %69, %cst_56 {dimension_numbers = #tpu.dot_dimension_numbers<[1], [0], [0], [1], [0, 0, 1, 1], [], []>} : vector<8x16xbf16>, vector<16x512xbf16>, vector<8x512xf32> -> vector<8x512xf32>
    %c0_57 = arith.constant 0 : index
    %c0_58 = arith.constant 0 : index
    %71 = vector.load %arg5[%c0_57, %c0_58] : memref<1x512xf32, #tpu.memory_space<vmem>>, vector<1x512xf32>
    %72 = vector.broadcast %71 : vector<1x512xf32> to vector<8x512xf32>
    %73 = arith.addf %70, %72 : vector<8x512xf32>
    %c40 = arith.constant 40 : index
    %c0_59 = arith.constant 0 : index
    %74 = vector.load %arg11[%c40, %c0_59] : memref<48x512xf32, #tpu.memory_space<vmem>>, vector<8x512xf32>
    tpu.vector_store %arg11[%c40, %c0_59], %73 {strides = array<i32>} : memref<48x512xf32, #tpu.memory_space<vmem>>, vector<8x512xf32>,
    %c0_60 = arith.constant 0 : index
    %c0_61 = arith.constant 0 : index
    %75 = vector.load %arg11[%c0_60, %c0_61] : memref<48x512xf32, #tpu.memory_space<vmem>>, vector<8x512xf32>
    %c40_62 = arith.constant 40 : index
    %c0_63 = arith.constant 0 : index
    %76 = vector.load %arg11[%c40_62, %c0_63] : memref<48x512xf32, #tpu.memory_space<vmem>>, vector<8x512xf32>
    %77 = arith.select %26, %75, %76 : vector<8x512xi1>, vector<8x512xf32>
    %c0_64 = arith.constant 0 : index
    %c0_65 = arith.constant 0 : index
    %78 = vector.load %arg12[%c0_64, %c0_65] : memref<8x128xf32, #tpu.memory_space<vmem>>, vector<8x128xf32>
    %79 = arith.truncf %78 : vector<8x128xf32> to vector<8x128xbf16>
    %c0_66 = arith.constant 0 : index
    %c0_67 = arith.constant 0 : index
    %80 = vector.load %arg4[%c0_66, %c0_67] : memref<128x512xbf16, #tpu.memory_space<vmem>>, vector<128x512xbf16>
    %cst_68 = arith.constant dense<0.000000e+00> : vector<8x512xf32>
    %81 = tpu.matmul %79, %80, %cst_68 {dimension_numbers = #tpu.dot_dimension_numbers<[1], [0], [0], [1], [0, 0, 1, 1], [], []>} : vector<8x128xbf16>, vector<128x512xbf16>, vector<8x512xf32> -> vector<8x512xf32>
    %82 = arith.addf %77, %81 : vector<8x512xf32>
    %83 = vector.extract_strided_slice %82 {offsets = [0, 0], sizes = [8, 128], strides = [1, 1]} : vector<8x512xf32> to vector<8x128xf32>
    %84 = arith.negf %83 : vector<8x128xf32>
    %85 = math.exp %84 : vector<8x128xf32>
    %cst_69 = arith.constant 1.000000e+00 : f32
    %86 = vector.broadcast %cst_69 : f32 to vector<8x128xf32>
    %87 = arith.addf %86, %85 : vector<8x128xf32>
    %88 = arith.divf %86, %87 : vector<8x128xf32>
    %89 = vector.extract_strided_slice %82 {offsets = [0, 128], sizes = [8, 128], strides = [1, 1]} : vector<8x512xf32> to vector<8x128xf32>
    %90 = arith.negf %89 : vector<8x128xf32>
    %91 = math.exp %90 : vector<8x128xf32>
    %cst_70 = arith.constant 1.000000e+00 : f32
    %92 = vector.broadcast %cst_70 : f32 to vector<8x128xf32>
    %93 = arith.addf %92, %91 : vector<8x128xf32>
    %94 = arith.divf %92, %93 : vector<8x128xf32>
    %95 = vector.extract_strided_slice %82 {offsets = [0, 256], sizes = [8, 128], strides = [1, 1]} : vector<8x512xf32> to vector<8x128xf32>
    %96 = math.tanh %95 : vector<8x128xf32>
    %97 = vector.extract_strided_slice %82 {offsets = [0, 384], sizes = [8, 128], strides = [1, 1]} : vector<8x512xf32> to vector<8x128xf32>
    %98 = arith.negf %97 : vector<8x128xf32>
    %99 = math.exp %98 : vector<8x128xf32>
    %cst_71 = arith.constant 1.000000e+00 : f32
    %100 = vector.broadcast %cst_71 : f32 to vector<8x128xf32>
    %101 = arith.addf %100, %99 : vector<8x128xf32>
    %102 = arith.divf %100, %101 : vector<8x128xf32>
    %c0_72 = arith.constant 0 : index
    %c0_73 = arith.constant 0 : index
    %103 = vector.load %arg13[%c0_72, %c0_73] : memref<8x128xf32, #tpu.memory_space<vmem>>, vector<8x128xf32>
    %104 = arith.mulf %94, %103 : vector<8x128xf32>
    %105 = arith.mulf %88, %96 : vector<8x128xf32>
    %106 = arith.addf %104, %105 : vector<8x128xf32>
    %107 = math.tanh %106 : vector<8x128xf32>
    %108 = arith.mulf %102, %107 : vector<8x128xf32>
    %c0_i32_74 = arith.constant 0 : i32
    %c5_i32 = arith.constant 5 : i32
    %109 = vector.broadcast %c0_i32_74 : i32 to vector<8x128xi32>
    %110 = vector.broadcast %c5_i32 : i32 to vector<8x128xi32>
    %111 = arith.select %7, %109, %110 : vector<8x128xi1>, vector<8x128xi32>
    %112 = vector.broadcast %4 : vector<8x1xi32> to vector<8x128xi32>
    %113 = arith.cmpi slt, %111, %112 : vector<8x128xi32>
    %c0_75 = arith.constant 0 : index
    %c0_76 = arith.constant 0 : index
    %114 = vector.load %arg13[%c0_75, %c0_76] : memref<8x128xf32, #tpu.memory_space<vmem>>, vector<8x128xf32>
    %115 = arith.select %113, %106, %114 : vector<8x128xi1>, vector<8x128xf32>
    %c0_77 = arith.constant 0 : index
    %c0_78 = arith.constant 0 : index
    %116 = vector.load %arg13[%c0_77, %c0_78] : memref<8x128xf32, #tpu.memory_space<vmem>>, vector<8x128xf32>
    tpu.vector_store %arg13[%c0_77, %c0_78], %115 {strides = array<i32>} : memref<8x128xf32, #tpu.memory_space<vmem>>, vector<8x128xf32>,
    %c0_79 = arith.constant 0 : index
    %c0_80 = arith.constant 0 : index
    %117 = vector.load %arg12[%c0_79, %c0_80] : memref<8x128xf32, #tpu.memory_space<vmem>>, vector<8x128xf32>
    %118 = arith.select %113, %108, %117 : vector<8x128xi1>, vector<8x128xf32>
    %c0_81 = arith.constant 0 : index
    %c0_82 = arith.constant 0 : index
    %119 = vector.load %arg12[%c0_81, %c0_82] : memref<8x128xf32, #tpu.memory_space<vmem>>, vector<8x128xf32>
    tpu.vector_store %arg12[%c0_81, %c0_82], %118 {strides = array<i32>} : memref<8x128xf32, #tpu.memory_space<vmem>>, vector<8x128xf32>,
    %c8_83 = arith.constant 8 : index
    %c0_84 = arith.constant 0 : index
    %120 = vector.load %arg11[%c8_83, %c0_84] : memref<48x512xf32, #tpu.memory_space<vmem>>, vector<8x512xf32>
    %c32_85 = arith.constant 32 : index
    %c0_86 = arith.constant 0 : index
    %121 = vector.load %arg11[%c32_85, %c0_86] : memref<48x512xf32, #tpu.memory_space<vmem>>, vector<8x512xf32>
    %122 = arith.select %26, %120, %121 : vector<8x512xi1>, vector<8x512xf32>
    %c0_87 = arith.constant 0 : index
    %c0_88 = arith.constant 0 : index
    %123 = vector.load %arg12[%c0_87, %c0_88] : memref<8x128xf32, #tpu.memory_space<vmem>>, vector<8x128xf32>
    %124 = arith.truncf %123 : vector<8x128xf32> to vector<8x128xbf16>
    %c0_89 = arith.constant 0 : index
    %c0_90 = arith.constant 0 : index
    %125 = vector.load %arg4[%c0_89, %c0_90] : memref<128x512xbf16, #tpu.memory_space<vmem>>, vector<128x512xbf16>
    %cst_91 = arith.constant dense<0.000000e+00> : vector<8x512xf32>
    %126 = tpu.matmul %124, %125, %cst_91 {dimension_numbers = #tpu.dot_dimension_numbers<[1], [0], [0], [1], [0, 0, 1, 1], [], []>} : vector<8x128xbf16>, vector<128x512xbf16>, vector<8x512xf32> -> vector<8x512xf32>
    %127 = arith.addf %122, %126 : vector<8x512xf32>
    %128 = vector.extract_strided_slice %127 {offsets = [0, 0], sizes = [8, 128], strides = [1, 1]} : vector<8x512xf32> to vector<8x128xf32>
    %129 = arith.negf %128 : vector<8x128xf32>
    %130 = math.exp %129 : vector<8x128xf32>
    %cst_92 = arith.constant 1.000000e+00 : f32
    %131 = vector.broadcast %cst_92 : f32 to vector<8x128xf32>
    %132 = arith.addf %131, %130 : vector<8x128xf32>
    %133 = arith.divf %131, %132 : vector<8x128xf32>
    %134 = vector.extract_strided_slice %127 {offsets = [0, 128], sizes = [8, 128], strides = [1, 1]} : vector<8x512xf32> to vector<8x128xf32>
    %135 = arith.negf %134 : vector<8x128xf32>
    %136 = math.exp %135 : vector<8x128xf32>
    %cst_93 = arith.constant 1.000000e+00 : f32
    %137 = vector.broadcast %cst_93 : f32 to vector<8x128xf32>
    %138 = arith.addf %137, %136 : vector<8x128xf32>
    %139 = arith.divf %137, %138 : vector<8x128xf32>
    %140 = vector.extract_strided_slice %127 {offsets = [0, 256], sizes = [8, 128], strides = [1, 1]} : vector<8x512xf32> to vector<8x128xf32>
    %141 = math.tanh %140 : vector<8x128xf32>
    %142 = vector.extract_strided_slice %127 {offsets = [0, 384], sizes = [8, 128], strides = [1, 1]} : vector<8x512xf32> to vector<8x128xf32>
    %143 = arith.negf %142 : vector<8x128xf32>
    %144 = math.exp %143 : vector<8x128xf32>
    %cst_94 = arith.constant 1.000000e+00 : f32
    %145 = vector.broadcast %cst_94 : f32 to vector<8x128xf32>
    %146 = arith.addf %145, %144 : vector<8x128xf32>
    %147 = arith.divf %145, %146 : vector<8x128xf32>
    %c0_95 = arith.constant 0 : index
    %c0_96 = arith.constant 0 : index
    %148 = vector.load %arg13[%c0_95, %c0_96] : memref<8x128xf32, #tpu.memory_space<vmem>>, vector<8x128xf32>
    %149 = arith.mulf %139, %148 : vector<8x128xf32>
    %150 = arith.mulf %133, %141 : vector<8x128xf32>
    %151 = arith.addf %149, %150 : vector<8x128xf32>
    %152 = math.tanh %151 : vector<8x128xf32>
    %153 = arith.mulf %147, %152 : vector<8x128xf32>
    %c1_i32_97 = arith.constant 1 : i32
    %c4_i32 = arith.constant 4 : i32
    %154 = vector.broadcast %c1_i32_97 : i32 to vector<8x128xi32>
    %155 = vector.broadcast %c4_i32 : i32 to vector<8x128xi32>
    %156 = arith.select %7, %154, %155 : vector<8x128xi1>, vector<8x128xi32>
    %157 = vector.broadcast %4 : vector<8x1xi32> to vector<8x128xi32>
    %158 = arith.cmpi slt, %156, %157 : vector<8x128xi32>
    %c0_98 = arith.constant 0 : index
    %c0_99 = arith.constant 0 : index
    %159 = vector.load %arg13[%c0_98, %c0_99] : memref<8x128xf32, #tpu.memory_space<vmem>>, vector<8x128xf32>
    %160 = arith.select %158, %151, %159 : vector<8x128xi1>, vector<8x128xf32>
    %c0_100 = arith.constant 0 : index
    %c0_101 = arith.constant 0 : index
    %161 = vector.load %arg13[%c0_100, %c0_101] : memref<8x128xf32, #tpu.memory_space<vmem>>, vector<8x128xf32>
    tpu.vector_store %arg13[%c0_100, %c0_101], %160 {strides = array<i32>} : memref<8x128xf32, #tpu.memory_space<vmem>>, vector<8x128xf32>,
    %c0_102 = arith.constant 0 : index
    %c0_103 = arith.constant 0 : index
    %162 = vector.load %arg12[%c0_102, %c0_103] : memref<8x128xf32, #tpu.memory_space<vmem>>, vector<8x128xf32>
    %163 = arith.select %158, %153, %162 : vector<8x128xi1>, vector<8x128xf32>
    %c0_104 = arith.constant 0 : index
    %c0_105 = arith.constant 0 : index
    %164 = vector.load %arg12[%c0_104, %c0_105] : memref<8x128xf32, #tpu.memory_space<vmem>>, vector<8x128xf32>
    tpu.vector_store %arg12[%c0_104, %c0_105], %163 {strides = array<i32>} : memref<8x128xf32, #tpu.memory_space<vmem>>, vector<8x128xf32>,
    %c16_106 = arith.constant 16 : index
    %c0_107 = arith.constant 0 : index
    %165 = vector.load %arg11[%c16_106, %c0_107] : memref<48x512xf32, #tpu.memory_space<vmem>>, vector<8x512xf32>
    %c24_108 = arith.constant 24 : index
    %c0_109 = arith.constant 0 : index
    %166 = vector.load %arg11[%c24_108, %c0_109] : memref<48x512xf32, #tpu.memory_space<vmem>>, vector<8x512xf32>
    %167 = arith.select %26, %165, %166 : vector<8x512xi1>, vector<8x512xf32>
    %c0_110 = arith.constant 0 : index
    %c0_111 = arith.constant 0 : index
    %168 = vector.load %arg12[%c0_110, %c0_111] : memref<8x128xf32, #tpu.memory_space<vmem>>, vector<8x128xf32>
    %169 = arith.truncf %168 : vector<8x128xf32> to vector<8x128xbf16>
    %c0_112 = arith.constant 0 : index
    %c0_113 = arith.constant 0 : index
    %170 = vector.load %arg4[%c0_112, %c0_113] : memref<128x512xbf16, #tpu.memory_space<vmem>>, vector<128x512xbf16>
    %cst_114 = arith.constant dense<0.000000e+00> : vector<8x512xf32>
    %171 = tpu.matmul %169, %170, %cst_114 {dimension_numbers = #tpu.dot_dimension_numbers<[1], [0], [0], [1], [0, 0, 1, 1], [], []>} : vector<8x128xbf16>, vector<128x512xbf16>, vector<8x512xf32> -> vector<8x512xf32>
    %172 = arith.addf %167, %171 : vector<8x512xf32>
    %173 = vector.extract_strided_slice %172 {offsets = [0, 0], sizes = [8, 128], strides = [1, 1]} : vector<8x512xf32> to vector<8x128xf32>
    %174 = arith.negf %173 : vector<8x128xf32>
    %175 = math.exp %174 : vector<8x128xf32>
    %cst_115 = arith.constant 1.000000e+00 : f32
    %176 = vector.broadcast %cst_115 : f32 to vector<8x128xf32>
    %177 = arith.addf %176, %175 : vector<8x128xf32>
    %178 = arith.divf %176, %177 : vector<8x128xf32>
    %179 = vector.extract_strided_slice %172 {offsets = [0, 128], sizes = [8, 128], strides = [1, 1]} : vector<8x512xf32> to vector<8x128xf32>
    %180 = arith.negf %179 : vector<8x128xf32>
    %181 = math.exp %180 : vector<8x128xf32>
    %cst_116 = arith.constant 1.000000e+00 : f32
    %182 = vector.broadcast %cst_116 : f32 to vector<8x128xf32>
    %183 = arith.addf %182, %181 : vector<8x128xf32>
    %184 = arith.divf %182, %183 : vector<8x128xf32>
    %185 = vector.extract_strided_slice %172 {offsets = [0, 256], sizes = [8, 128], strides = [1, 1]} : vector<8x512xf32> to vector<8x128xf32>
    %186 = math.tanh %185 : vector<8x128xf32>
    %187 = vector.extract_strided_slice %172 {offsets = [0, 384], sizes = [8, 128], strides = [1, 1]} : vector<8x512xf32> to vector<8x128xf32>
    %188 = arith.negf %187 : vector<8x128xf32>
    %189 = math.exp %188 : vector<8x128xf32>
    %cst_117 = arith.constant 1.000000e+00 : f32
    %190 = vector.broadcast %cst_117 : f32 to vector<8x128xf32>
    %191 = arith.addf %190, %189 : vector<8x128xf32>
    %192 = arith.divf %190, %191 : vector<8x128xf32>
    %c0_118 = arith.constant 0 : index
    %c0_119 = arith.constant 0 : index
    %193 = vector.load %arg13[%c0_118, %c0_119] : memref<8x128xf32, #tpu.memory_space<vmem>>, vector<8x128xf32>
    %194 = arith.mulf %184, %193 : vector<8x128xf32>
    %195 = arith.mulf %178, %186 : vector<8x128xf32>
    %196 = arith.addf %194, %195 : vector<8x128xf32>
    %197 = math.tanh %196 : vector<8x128xf32>
    %198 = arith.mulf %192, %197 : vector<8x128xf32>
    %c2_i32 = arith.constant 2 : i32
    %c3_i32 = arith.constant 3 : i32
    %199 = vector.broadcast %c2_i32 : i32 to vector<8x128xi32>
    %200 = vector.broadcast %c3_i32 : i32 to vector<8x128xi32>
    %201 = arith.select %7, %199, %200 : vector<8x128xi1>, vector<8x128xi32>
    %202 = vector.broadcast %4 : vector<8x1xi32> to vector<8x128xi32>
    %203 = arith.cmpi slt, %201, %202 : vector<8x128xi32>
    %c0_120 = arith.constant 0 : index
    %c0_121 = arith.constant 0 : index
    %204 = vector.load %arg13[%c0_120, %c0_121] : memref<8x128xf32, #tpu.memory_space<vmem>>, vector<8x128xf32>
    %205 = arith.select %203, %196, %204 : vector<8x128xi1>, vector<8x128xf32>
    %c0_122 = arith.constant 0 : index
    %c0_123 = arith.constant 0 : index
    %206 = vector.load %arg13[%c0_122, %c0_123] : memref<8x128xf32, #tpu.memory_space<vmem>>, vector<8x128xf32>
    tpu.vector_store %arg13[%c0_122, %c0_123], %205 {strides = array<i32>} : memref<8x128xf32, #tpu.memory_space<vmem>>, vector<8x128xf32>,
    %c0_124 = arith.constant 0 : index
    %c0_125 = arith.constant 0 : index
    %207 = vector.load %arg12[%c0_124, %c0_125] : memref<8x128xf32, #tpu.memory_space<vmem>>, vector<8x128xf32>
    %208 = arith.select %203, %198, %207 : vector<8x128xi1>, vector<8x128xf32>
    %c0_126 = arith.constant 0 : index
    %c0_127 = arith.constant 0 : index
    %209 = vector.load %arg12[%c0_126, %c0_127] : memref<8x128xf32, #tpu.memory_space<vmem>>, vector<8x128xf32>
    tpu.vector_store %arg12[%c0_126, %c0_127], %208 {strides = array<i32>} : memref<8x128xf32, #tpu.memory_space<vmem>>, vector<8x128xf32>,
    %c24_128 = arith.constant 24 : index
    %c0_129 = arith.constant 0 : index
    %210 = vector.load %arg11[%c24_128, %c0_129] : memref<48x512xf32, #tpu.memory_space<vmem>>, vector<8x512xf32>
    %c16_130 = arith.constant 16 : index
    %c0_131 = arith.constant 0 : index
    %211 = vector.load %arg11[%c16_130, %c0_131] : memref<48x512xf32, #tpu.memory_space<vmem>>, vector<8x512xf32>
    %212 = arith.select %26, %210, %211 : vector<8x512xi1>, vector<8x512xf32>
    %c0_132 = arith.constant 0 : index
    %c0_133 = arith.constant 0 : index
    %213 = vector.load %arg12[%c0_132, %c0_133] : memref<8x128xf32, #tpu.memory_space<vmem>>, vector<8x128xf32>
    %214 = arith.truncf %213 : vector<8x128xf32> to vector<8x128xbf16>
    %c0_134 = arith.constant 0 : index
    %c0_135 = arith.constant 0 : index
    %215 = vector.load %arg4[%c0_134, %c0_135] : memref<128x512xbf16, #tpu.memory_space<vmem>>, vector<128x512xbf16>
    %cst_136 = arith.constant dense<0.000000e+00> : vector<8x512xf32>
    %216 = tpu.matmul %214, %215, %cst_136 {dimension_numbers = #tpu.dot_dimension_numbers<[1], [0], [0], [1], [0, 0, 1, 1], [], []>} : vector<8x128xbf16>, vector<128x512xbf16>, vector<8x512xf32> -> vector<8x512xf32>
    %217 = arith.addf %212, %216 : vector<8x512xf32>
    %218 = vector.extract_strided_slice %217 {offsets = [0, 0], sizes = [8, 128], strides = [1, 1]} : vector<8x512xf32> to vector<8x128xf32>
    %219 = arith.negf %218 : vector<8x128xf32>
    %220 = math.exp %219 : vector<8x128xf32>
    %cst_137 = arith.constant 1.000000e+00 : f32
    %221 = vector.broadcast %cst_137 : f32 to vector<8x128xf32>
    %222 = arith.addf %221, %220 : vector<8x128xf32>
    %223 = arith.divf %221, %222 : vector<8x128xf32>
    %224 = vector.extract_strided_slice %217 {offsets = [0, 128], sizes = [8, 128], strides = [1, 1]} : vector<8x512xf32> to vector<8x128xf32>
    %225 = arith.negf %224 : vector<8x128xf32>
    %226 = math.exp %225 : vector<8x128xf32>
    %cst_138 = arith.constant 1.000000e+00 : f32
    %227 = vector.broadcast %cst_138 : f32 to vector<8x128xf32>
    %228 = arith.addf %227, %226 : vector<8x128xf32>
    %229 = arith.divf %227, %228 : vector<8x128xf32>
    %230 = vector.extract_strided_slice %217 {offsets = [0, 256], sizes = [8, 128], strides = [1, 1]} : vector<8x512xf32> to vector<8x128xf32>
    %231 = math.tanh %230 : vector<8x128xf32>
    %232 = vector.extract_strided_slice %217 {offsets = [0, 384], sizes = [8, 128], strides = [1, 1]} : vector<8x512xf32> to vector<8x128xf32>
    %233 = arith.negf %232 : vector<8x128xf32>
    %234 = math.exp %233 : vector<8x128xf32>
    %cst_139 = arith.constant 1.000000e+00 : f32
    %235 = vector.broadcast %cst_139 : f32 to vector<8x128xf32>
    %236 = arith.addf %235, %234 : vector<8x128xf32>
    %237 = arith.divf %235, %236 : vector<8x128xf32>
    %c0_140 = arith.constant 0 : index
    %c0_141 = arith.constant 0 : index
    %238 = vector.load %arg13[%c0_140, %c0_141] : memref<8x128xf32, #tpu.memory_space<vmem>>, vector<8x128xf32>
    %239 = arith.mulf %229, %238 : vector<8x128xf32>
    %240 = arith.mulf %223, %231 : vector<8x128xf32>
    %241 = arith.addf %239, %240 : vector<8x128xf32>
    %242 = math.tanh %241 : vector<8x128xf32>
    %243 = arith.mulf %237, %242 : vector<8x128xf32>
    %c3_i32_142 = arith.constant 3 : i32
    %c2_i32_143 = arith.constant 2 : i32
    %244 = vector.broadcast %c3_i32_142 : i32 to vector<8x128xi32>
    %245 = vector.broadcast %c2_i32_143 : i32 to vector<8x128xi32>
    %246 = arith.select %7, %244, %245 : vector<8x128xi1>, vector<8x128xi32>
    %247 = vector.broadcast %4 : vector<8x1xi32> to vector<8x128xi32>
    %248 = arith.cmpi slt, %246, %247 : vector<8x128xi32>
    %c0_144 = arith.constant 0 : index
    %c0_145 = arith.constant 0 : index
    %249 = vector.load %arg13[%c0_144, %c0_145] : memref<8x128xf32, #tpu.memory_space<vmem>>, vector<8x128xf32>
    %250 = arith.select %248, %241, %249 : vector<8x128xi1>, vector<8x128xf32>
    %c0_146 = arith.constant 0 : index
    %c0_147 = arith.constant 0 : index
    %251 = vector.load %arg13[%c0_146, %c0_147] : memref<8x128xf32, #tpu.memory_space<vmem>>, vector<8x128xf32>
    tpu.vector_store %arg13[%c0_146, %c0_147], %250 {strides = array<i32>} : memref<8x128xf32, #tpu.memory_space<vmem>>, vector<8x128xf32>,
    %c0_148 = arith.constant 0 : index
    %c0_149 = arith.constant 0 : index
    %252 = vector.load %arg12[%c0_148, %c0_149] : memref<8x128xf32, #tpu.memory_space<vmem>>, vector<8x128xf32>
    %253 = arith.select %248, %243, %252 : vector<8x128xi1>, vector<8x128xf32>
    %c0_150 = arith.constant 0 : index
    %c0_151 = arith.constant 0 : index
    %254 = vector.load %arg12[%c0_150, %c0_151] : memref<8x128xf32, #tpu.memory_space<vmem>>, vector<8x128xf32>
    tpu.vector_store %arg12[%c0_150, %c0_151], %253 {strides = array<i32>} : memref<8x128xf32, #tpu.memory_space<vmem>>, vector<8x128xf32>,
    %c32_152 = arith.constant 32 : index
    %c0_153 = arith.constant 0 : index
    %255 = vector.load %arg11[%c32_152, %c0_153] : memref<48x512xf32, #tpu.memory_space<vmem>>, vector<8x512xf32>
    %c8_154 = arith.constant 8 : index
    %c0_155 = arith.constant 0 : index
    %256 = vector.load %arg11[%c8_154, %c0_155] : memref<48x512xf32, #tpu.memory_space<vmem>>, vector<8x512xf32>
    %257 = arith.select %26, %255, %256 : vector<8x512xi1>, vector<8x512xf32>
    %c0_156 = arith.constant 0 : index
    %c0_157 = arith.constant 0 : index
    %258 = vector.load %arg12[%c0_156, %c0_157] : memref<8x128xf32, #tpu.memory_space<vmem>>, vector<8x128xf32>
    %259 = arith.truncf %258 : vector<8x128xf32> to vector<8x128xbf16>
    %c0_158 = arith.constant 0 : index
    %c0_159 = arith.constant 0 : index
    %260 = vector.load %arg4[%c0_158, %c0_159] : memref<128x512xbf16, #tpu.memory_space<vmem>>, vector<128x512xbf16>
    %cst_160 = arith.constant dense<0.000000e+00> : vector<8x512xf32>
    %261 = tpu.matmul %259, %260, %cst_160 {dimension_numbers = #tpu.dot_dimension_numbers<[1], [0], [0], [1], [0, 0, 1, 1], [], []>} : vector<8x128xbf16>, vector<128x512xbf16>, vector<8x512xf32> -> vector<8x512xf32>
    %262 = arith.addf %257, %261 : vector<8x512xf32>
    %263 = vector.extract_strided_slice %262 {offsets = [0, 0], sizes = [8, 128], strides = [1, 1]} : vector<8x512xf32> to vector<8x128xf32>
    %264 = arith.negf %263 : vector<8x128xf32>
    %265 = math.exp %264 : vector<8x128xf32>
    %cst_161 = arith.constant 1.000000e+00 : f32
    %266 = vector.broadcast %cst_161 : f32 to vector<8x128xf32>
    %267 = arith.addf %266, %265 : vector<8x128xf32>
    %268 = arith.divf %266, %267 : vector<8x128xf32>
    %269 = vector.extract_strided_slice %262 {offsets = [0, 128], sizes = [8, 128], strides = [1, 1]} : vector<8x512xf32> to vector<8x128xf32>
    %270 = arith.negf %269 : vector<8x128xf32>
    %271 = math.exp %270 : vector<8x128xf32>
    %cst_162 = arith.constant 1.000000e+00 : f32
    %272 = vector.broadcast %cst_162 : f32 to vector<8x128xf32>
    %273 = arith.addf %272, %271 : vector<8x128xf32>
    %274 = arith.divf %272, %273 : vector<8x128xf32>
    %275 = vector.extract_strided_slice %262 {offsets = [0, 256], sizes = [8, 128], strides = [1, 1]} : vector<8x512xf32> to vector<8x128xf32>
    %276 = math.tanh %275 : vector<8x128xf32>
    %277 = vector.extract_strided_slice %262 {offsets = [0, 384], sizes = [8, 128], strides = [1, 1]} : vector<8x512xf32> to vector<8x128xf32>
    %278 = arith.negf %277 : vector<8x128xf32>
    %279 = math.exp %278 : vector<8x128xf32>
    %cst_163 = arith.constant 1.000000e+00 : f32
    %280 = vector.broadcast %cst_163 : f32 to vector<8x128xf32>
    %281 = arith.addf %280, %279 : vector<8x128xf32>
    %282 = arith.divf %280, %281 : vector<8x128xf32>
    %c0_164 = arith.constant 0 : index
    %c0_165 = arith.constant 0 : index
    %283 = vector.load %arg13[%c0_164, %c0_165] : memref<8x128xf32, #tpu.memory_space<vmem>>, vector<8x128xf32>
    %284 = arith.mulf %274, %283 : vector<8x128xf32>
    %285 = arith.mulf %268, %276 : vector<8x128xf32>
    %286 = arith.addf %284, %285 : vector<8x128xf32>
    %287 = math.tanh %286 : vector<8x128xf32>
    %288 = arith.mulf %282, %287 : vector<8x128xf32>
    %c4_i32_166 = arith.constant 4 : i32
    %c1_i32_167 = arith.constant 1 : i32
    %289 = vector.broadcast %c4_i32_166 : i32 to vector<8x128xi32>
    %290 = vector.broadcast %c1_i32_167 : i32 to vector<8x128xi32>
    %291 = arith.select %7, %289, %290 : vector<8x128xi1>, vector<8x128xi32>
    %292 = vector.broadcast %4 : vector<8x1xi32> to vector<8x128xi32>
    %293 = arith.cmpi slt, %291, %292 : vector<8x128xi32>
    %c0_168 = arith.constant 0 : index
    %c0_169 = arith.constant 0 : index
    %294 = vector.load %arg13[%c0_168, %c0_169] : memref<8x128xf32, #tpu.memory_space<vmem>>, vector<8x128xf32>
    %295 = arith.select %293, %286, %294 : vector<8x128xi1>, vector<8x128xf32>
    %c0_170 = arith.constant 0 : index
    %c0_171 = arith.constant 0 : index
    %296 = vector.load %arg13[%c0_170, %c0_171] : memref<8x128xf32, #tpu.memory_space<vmem>>, vector<8x128xf32>
    tpu.vector_store %arg13[%c0_170, %c0_171], %295 {strides = array<i32>} : memref<8x128xf32, #tpu.memory_space<vmem>>, vector<8x128xf32>,
    %c0_172 = arith.constant 0 : index
    %c0_173 = arith.constant 0 : index
    %297 = vector.load %arg12[%c0_172, %c0_173] : memref<8x128xf32, #tpu.memory_space<vmem>>, vector<8x128xf32>
    %298 = arith.select %293, %288, %297 : vector<8x128xi1>, vector<8x128xf32>
    %c0_174 = arith.constant 0 : index
    %c0_175 = arith.constant 0 : index
    %299 = vector.load %arg12[%c0_174, %c0_175] : memref<8x128xf32, #tpu.memory_space<vmem>>, vector<8x128xf32>
    tpu.vector_store %arg12[%c0_174, %c0_175], %298 {strides = array<i32>} : memref<8x128xf32, #tpu.memory_space<vmem>>, vector<8x128xf32>,
    %c40_176 = arith.constant 40 : index
    %c0_177 = arith.constant 0 : index
    %300 = vector.load %arg11[%c40_176, %c0_177] : memref<48x512xf32, #tpu.memory_space<vmem>>, vector<8x512xf32>
    %c0_178 = arith.constant 0 : index
    %c0_179 = arith.constant 0 : index
    %301 = vector.load %arg11[%c0_178, %c0_179] : memref<48x512xf32, #tpu.memory_space<vmem>>, vector<8x512xf32>
    %302 = arith.select %26, %300, %301 : vector<8x512xi1>, vector<8x512xf32>
    %c0_180 = arith.constant 0 : index
    %c0_181 = arith.constant 0 : index
    %303 = vector.load %arg12[%c0_180, %c0_181] : memref<8x128xf32, #tpu.memory_space<vmem>>, vector<8x128xf32>
    %304 = arith.truncf %303 : vector<8x128xf32> to vector<8x128xbf16>
    %c0_182 = arith.constant 0 : index
    %c0_183 = arith.constant 0 : index
    %305 = vector.load %arg4[%c0_182, %c0_183] : memref<128x512xbf16, #tpu.memory_space<vmem>>, vector<128x512xbf16>
    %cst_184 = arith.constant dense<0.000000e+00> : vector<8x512xf32>
    %306 = tpu.matmul %304, %305, %cst_184 {dimension_numbers = #tpu.dot_dimension_numbers<[1], [0], [0], [1], [0, 0, 1, 1], [], []>} : vector<8x128xbf16>, vector<128x512xbf16>, vector<8x512xf32> -> vector<8x512xf32>
    %307 = arith.addf %302, %306 : vector<8x512xf32>
    %308 = vector.extract_strided_slice %307 {offsets = [0, 0], sizes = [8, 128], strides = [1, 1]} : vector<8x512xf32> to vector<8x128xf32>
    %309 = arith.negf %308 : vector<8x128xf32>
    %310 = math.exp %309 : vector<8x128xf32>
    %cst_185 = arith.constant 1.000000e+00 : f32
    %311 = vector.broadcast %cst_185 : f32 to vector<8x128xf32>
    %312 = arith.addf %311, %310 : vector<8x128xf32>
    %313 = arith.divf %311, %312 : vector<8x128xf32>
    %314 = vector.extract_strided_slice %307 {offsets = [0, 128], sizes = [8, 128], strides = [1, 1]} : vector<8x512xf32> to vector<8x128xf32>
    %315 = arith.negf %314 : vector<8x128xf32>
    %316 = math.exp %315 : vector<8x128xf32>
    %cst_186 = arith.constant 1.000000e+00 : f32
    %317 = vector.broadcast %cst_186 : f32 to vector<8x128xf32>
    %318 = arith.addf %317, %316 : vector<8x128xf32>
    %319 = arith.divf %317, %318 : vector<8x128xf32>
    %320 = vector.extract_strided_slice %307 {offsets = [0, 256], sizes = [8, 128], strides = [1, 1]} : vector<8x512xf32> to vector<8x128xf32>
    %321 = math.tanh %320 : vector<8x128xf32>
    %322 = vector.extract_strided_slice %307 {offsets = [0, 384], sizes = [8, 128], strides = [1, 1]} : vector<8x512xf32> to vector<8x128xf32>
    %323 = arith.negf %322 : vector<8x128xf32>
    %324 = math.exp %323 : vector<8x128xf32>
    %cst_187 = arith.constant 1.000000e+00 : f32
    %325 = vector.broadcast %cst_187 : f32 to vector<8x128xf32>
    %326 = arith.addf %325, %324 : vector<8x128xf32>
    %327 = arith.divf %325, %326 : vector<8x128xf32>
    %c0_188 = arith.constant 0 : index
    %c0_189 = arith.constant 0 : index
    %328 = vector.load %arg13[%c0_188, %c0_189] : memref<8x128xf32, #tpu.memory_space<vmem>>, vector<8x128xf32>
    %329 = arith.mulf %319, %328 : vector<8x128xf32>
    %330 = arith.mulf %313, %321 : vector<8x128xf32>
    %331 = arith.addf %329, %330 : vector<8x128xf32>
    %332 = math.tanh %331 : vector<8x128xf32>
    %333 = arith.mulf %327, %332 : vector<8x128xf32>
    %c5_i32_190 = arith.constant 5 : i32
    %c0_i32_191 = arith.constant 0 : i32
    %334 = vector.broadcast %c5_i32_190 : i32 to vector<8x128xi32>
    %335 = vector.broadcast %c0_i32_191 : i32 to vector<8x128xi32>
    %336 = arith.select %7, %334, %335 : vector<8x128xi1>, vector<8x128xi32>
    %337 = vector.broadcast %4 : vector<8x1xi32> to vector<8x128xi32>
    %338 = arith.cmpi slt, %336, %337 : vector<8x128xi32>
    %c0_192 = arith.constant 0 : index
    %c0_193 = arith.constant 0 : index
    %339 = vector.load %arg13[%c0_192, %c0_193] : memref<8x128xf32, #tpu.memory_space<vmem>>, vector<8x128xf32>
    %340 = arith.select %338, %331, %339 : vector<8x128xi1>, vector<8x128xf32>
    %c0_194 = arith.constant 0 : index
    %c0_195 = arith.constant 0 : index
    %341 = vector.load %arg13[%c0_194, %c0_195] : memref<8x128xf32, #tpu.memory_space<vmem>>, vector<8x128xf32>
    tpu.vector_store %arg13[%c0_194, %c0_195], %340 {strides = array<i32>} : memref<8x128xf32, #tpu.memory_space<vmem>>, vector<8x128xf32>,
    %c0_196 = arith.constant 0 : index
    %c0_197 = arith.constant 0 : index
    %342 = vector.load %arg12[%c0_196, %c0_197] : memref<8x128xf32, #tpu.memory_space<vmem>>, vector<8x128xf32>
    %343 = arith.select %338, %333, %342 : vector<8x128xi1>, vector<8x128xf32>
    %c0_198 = arith.constant 0 : index
    %c0_199 = arith.constant 0 : index
    %344 = vector.load %arg12[%c0_198, %c0_199] : memref<8x128xf32, #tpu.memory_space<vmem>>, vector<8x128xf32>
    tpu.vector_store %arg12[%c0_198, %c0_199], %343 {strides = array<i32>} : memref<8x128xf32, #tpu.memory_space<vmem>>, vector<8x128xf32>,
    %c0_200 = arith.constant 0 : index
    %c0_201 = arith.constant 0 : index
    %345 = vector.load %arg12[%c0_200, %c0_201] : memref<8x128xf32, #tpu.memory_space<vmem>>, vector<8x128xf32>
    %c0_202 = arith.constant 0 : index
    %c0_203 = arith.constant 0 : index
    %346 = vector.load %arg9[%c0_202, %c0_203] : memref<8x128xf32, #tpu.memory_space<vmem>>, vector<8x128xf32>
    tpu.vector_store %arg9[%c0_202, %c0_203], %345 {strides = array<i32>} : memref<8x128xf32, #tpu.memory_space<vmem>>, vector<8x128xf32>,
    %347 = arith.truncf %345 : vector<8x128xf32> to vector<8x128xbf16>
    %c0_204 = arith.constant 0 : index
    %c0_205 = arith.constant 0 : index
    %348 = vector.load %arg7[%c0_204, %c0_205] : memref<8x1xi32, #tpu.memory_space<vmem>>, vector<8x1xi32>
    %cst_206 = arith.constant -1.000000e+30 : f32
    %349 = vector.broadcast %cst_206 : f32 to vector<8x1xf32>
    %cst_207 = arith.constant 0.000000e+00 : f32
    %350 = vector.broadcast %cst_207 : f32 to vector<8x1xf32>
    %cst_208 = arith.constant 0.000000e+00 : f32
    %351 = vector.broadcast %cst_208 : f32 to vector<8x1xf32>
    %c0_209 = arith.constant 0 : index
    %c0_210 = arith.constant 0 : index
    %352 = vector.load %arg6[%c0_209, %c0_210] : memref<128x128xbf16, #tpu.memory_space<vmem>>, vector<128x128xbf16>
    %cst_211 = arith.constant dense<0.000000e+00> : vector<8x128xf32>
    %353 = tpu.matmul %347, %352, %cst_211 {dimension_numbers = #tpu.dot_dimension_numbers<[1], [0], [0], [1], [0, 0, 1, 1], [], []>} : vector<8x128xbf16>, vector<128x128xbf16>, vector<8x128xf32> -> vector<8x128xf32>
    %354 = tpu.iota {dimensions = array<i32: 1>} : vector<8x128xi32>
    %c0_i32_212 = arith.constant 0 : i32
    %355 = vector.broadcast %c0_i32_212 : i32 to vector<8x128xi32>
    %356 = arith.addi %354, %355 : vector<8x128xi32>
    %c24_i32 = arith.constant 24 : i32
    %357 = vector.broadcast %c24_i32 : i32 to vector<8x128xi32>
    %358 = arith.cmpi slt, %356, %357 : vector<8x128xi32>
    %cst_213 = arith.constant -1.000000e+30 : f32
    %359 = vector.broadcast %cst_213 : f32 to vector<8x128xf32>
    %360 = arith.select %358, %353, %359 : vector<8x128xi1>, vector<8x128xf32>
    %cst_214 = arith.constant dense<0xFF800000> : vector<8xf32>
    %361 = vector.multi_reduction <maximumf>, %360, %cst_214 [1] : vector<8x128xf32> to vector<8xf32>
    %362 = vector.shape_cast %361 : vector<8xf32> to vector<8x1xf32>
    %363 = arith.maximumf %349, %362 : vector<8x1xf32>
    %364 = arith.subf %349, %363 : vector<8x1xf32>
    %365 = math.exp %364 : vector<8x1xf32>
    %366 = arith.mulf %350, %365 : vector<8x1xf32>
    %367 = vector.broadcast %363 : vector<8x1xf32> to vector<8x128xf32>
    %368 = arith.subf %360, %367 : vector<8x128xf32>
    %369 = math.exp %368 : vector<8x128xf32>
    %cst_215 = arith.constant dense<0.000000e+00> : vector<8xf32>
    %370 = vector.multi_reduction <add>, %369, %cst_215 [1] : vector<8x128xf32> to vector<8xf32>
    %371 = vector.shape_cast %370 : vector<8xf32> to vector<8x1xf32>
    %372 = arith.addf %366, %371 : vector<8x1xf32>
    %373 = vector.broadcast %348 : vector<8x1xi32> to vector<8x128xi32>
    %374 = arith.cmpi eq, %356, %373 : vector<8x128xi32>
    %cst_216 = arith.constant 0.000000e+00 : f32
    %375 = vector.broadcast %cst_216 : f32 to vector<8x128xf32>
    %376 = arith.select %374, %360, %375 : vector<8x128xi1>, vector<8x128xf32>
    %cst_217 = arith.constant dense<0.000000e+00> : vector<8xf32>
    %377 = vector.multi_reduction <add>, %376, %cst_217 [1] : vector<8x128xf32> to vector<8xf32>
    %378 = vector.shape_cast %377 : vector<8xf32> to vector<8x1xf32>
    %379 = arith.addf %351, %378 : vector<8x1xf32>
    %380 = math.log %372 : vector<8x1xf32>
    %381 = arith.addf %380, %363 : vector<8x1xf32>
    %382 = arith.subf %381, %379 : vector<8x1xf32>
    %c0_218 = arith.constant 0 : index
    %c0_219 = arith.constant 0 : index
    %383 = vector.load %arg8[%c0_218, %c0_219] : memref<8x1xf32, #tpu.memory_space<vmem>>, vector<8x1xf32>
    %384 = arith.mulf %382, %383 : vector<8x1xf32>
    %cst_220 = arith.constant 0.000000e+00 : f32
    %385 = vector.broadcast %cst_220 : f32 to vector<1x8x128xf32>
    %386 = vector.shape_cast %384 : vector<8x1xf32> to vector<1x8x1xf32>
    %cst_221 = arith.constant dense<0.000000e+00> : vector<1xf32>
    %387 = vector.multi_reduction <add>, %386, %cst_221 [1, 2] : vector<1x8x1xf32> to vector<1xf32>
    %388 = vector.shape_cast %387 : vector<1xf32> to vector<1x1x1xf32>
    %389 = vector.extract %388[0, 0, 0] : f32 from vector<1x1x1xf32>
    %390 = vector.broadcast %389 : f32 to vector<1x8x128xf32>
    %391 = arith.addf %385, %390 : vector<1x8x128xf32>
    %c0_222 = arith.constant 0 : index
    %c0_223 = arith.constant 0 : index
    %c0_224 = arith.constant 0 : index
    %392 = vector.load %arg10[%c0_222, %c0_223, %c0_224] : memref<1x8x128xf32, #tpu.memory_space<vmem>>, vector<1x8x128xf32>
    tpu.vector_store %arg10[%c0_222, %c0_223, %c0_224], %391 {strides = array<i32>} : memref<1x8x128xf32, #tpu.memory_space<vmem>>, vector<1x8x128xf32>,
    return
  }
  func.func @transform_0(%arg0: i32) -> (i32, i32, i32) {
    %c0_i32 = arith.constant 0 : i32
    %c0_i32_0 = arith.constant 0 : i32
    %c0_i32_1 = arith.constant 0 : i32
    return %c0_i32, %arg0, %c0_i32_0 : i32, i32, i32
  }
  func.func @transform_1(%arg0: i32) -> (i32, i32) {
    %c0_i32 = arith.constant 0 : i32
    %c0_i32_0 = arith.constant 0 : i32
    return %arg0, %c0_i32 : i32, i32
  }
  func.func @transform_2(%arg0: i32) -> (i32, i32) {
    %c0_i32 = arith.constant 0 : i32
    %c0_i32_0 = arith.constant 0 : i32
    %c0_i32_1 = arith.constant 0 : i32
    return %c0_i32, %c0_i32_0 : i32, i32
  }
  func.func @transform_3(%arg0: i32) -> (i32, i32) {
    %c0_i32 = arith.constant 0 : i32
    %c0_i32_0 = arith.constant 0 : i32
    %c0_i32_1 = arith.constant 0 : i32
    return %c0_i32, %c0_i32_0 : i32, i32
  }
  func.func @transform_4(%arg0: i32) -> (i32, i32) {
    %c0_i32 = arith.constant 0 : i32
    %c0_i32_0 = arith.constant 0 : i32
    %c0_i32_1 = arith.constant 0 : i32
    return %c0_i32, %c0_i32_0 : i32, i32
  }
  func.func @transform_5(%arg0: i32) -> (i32, i32) {
    %c0_i32 = arith.constant 0 : i32
    %c0_i32_0 = arith.constant 0 : i32
    %c0_i32_1 = arith.constant 0 : i32
    return %c0_i32, %c0_i32_0 : i32, i32
  }
  func.func @transform_6(%arg0: i32) -> (i32, i32) {
    %c0_i32 = arith.constant 0 : i32
    %c0_i32_0 = arith.constant 0 : i32
    return %arg0, %c0_i32 : i32, i32
  }
  func.func @transform_7(%arg0: i32) -> (i32, i32) {
    %c0_i32 = arith.constant 0 : i32
    %c0_i32_0 = arith.constant 0 : i32
    return %arg0, %c0_i32 : i32, i32
  }
  func.func @transform_8(%arg0: i32) -> (i32, i32) {
    %c0_i32 = arith.constant 0 : i32
    %c0_i32_0 = arith.constant 0 : i32
    return %arg0, %c0_i32 : i32, i32
  }
  func.func @transform_9(%arg0: i32) -> (i32, i32, i32) {
    %c0_i32 = arith.constant 0 : i32
    %c0_i32_0 = arith.constant 0 : i32
    %c0_i32_1 = arith.constant 0 : i32
    return %arg0, %c0_i32, %c0_i32_0 : i32, i32, i32
  }
}

</mosaic_0001>

<bundles_post_ra>
// kernel: tpu_custom_call.1
= control target key start
LH: loop header
LB: loop body
LE: loop exit
PB: predicated region body
PF: predicated region fallthrough
CT: control target
= control target key end

     0   :  { %15 = vsyncpa [#allocation6], 0  ;;  %s4646_s0 = inlined_call_operand.hbm [shape: bf16[6,8,16], index: 0, kind: input, shape index: {}]   ;;  %s4647_s1 = inlined_call_operand.vmem [shape: s32[8,1], index: 1, kind: input, shape index: {}]   ;;  %s4648_s2 = inlined_call_operand.vmem [shape: bf16[16,512], index: 2, kind: input, shape index: {}]   ;;  %s4649_s3 = inlined_call_operand.hbm [shape: bf16[128,512], index: 3, kind: input, shape index: {}]   ;;  %s4650_s4 = inlined_call_operand.vmem [shape: f32[1,512], index: 4, kind: input, shape index: {}]   ;;  %s4651_s5 = inlined_call_operand.hbm [shape: bf16[128,128], index: 5, kind: input, shape index: {}]   ;;  %s4652_s6 = inlined_call_operand.vmem [shape: s32[8,1], index: 6, kind: input, shape index: {}]   ;;  %s4653_s7 = inlined_call_operand.vmem [shape: f32[8,1], index: 7, kind: input, shape index: {}]   ;;  %s4654_s8 = inlined_call_operand.hbm [shape: f32[8,128], index: 8, kind: output, shape index: {0}]   ;;  %s4655_s9 = inlined_call_operand.hbm [shape: f32[1,8,128], index: 9, kind: output, shape index: {1}]  }
   0x1   :  { %16 = vsyncpa [#allocation9], 0 }
   0x2   :  { %17 = vsyncpa [#allocation7], 0 }
   0x3   :  { %18 = vsyncpa [#allocation13], 0  ;;  %s3727_s30 = smov [#allocation8]   ;;  %s3609_s13 = scalar_lea.hbm %s4649_s3, 4096 }
   0x4   :  { %s40_s10 = sshll.u32 %s3727_s30, 4  ;;  %p3610_p0 = scmp.ne.s32.totalorder %s4649_s3, %s3609_s13  ;;  %s41_s10 = int_to_ptr.vmem [resolvable:$true] %s40_s10 }
   0x5   :  { %p3613_p1 = scmp.lt.u32.totalorder %s3609_s13, %s4649_s3 }
   0x7   :  { %p3615_p2 = pnand %p3613_p1, %p3610_p0 }
   0x9   :  { %3618 = shalt.err (!%p3615_p2)
}
   0xa   :  { %s3619_s18 = scalar_lea.vmem %s41_s10, 4096  ;;  %p3624_p4 = scmp.lt.s32.totalorder %s41_s10, %s41_s10 }
   0xb   :  { %p3620_p3 = scmp.ne.s32.totalorder %s41_s10, %s3619_s18  ;;  %p3625_p5 = scmp.lt.s32.totalorder %s3619_s18, %s3619_s18 }
   0xd   :  { %p3626_p6 = por %p3625_p5, %p3624_p4 }
   0xf   :  { %p3627_p7 = pnand %p3626_p6, %p3620_p3 }
  0x11   :  { %3630 = shalt.err (!%p3627_p7)
}
  0x12   :  { %s3728_s19 = smov 256   ;;  %s3729_s20 = smov 16  }
  0x13   :  { %46 = dma.hbm_to_vmem [thread:$0]  %s4649_s3, 4096, %s41_s10, [#allocation9], %s3728_s19, %s3728_s19, %s3729_s20  }
  0x14   :  { %s3730_s23 = smov [#allocation5]   ;;  %s3631_s27 = scalar_lea.hbm %s4646_s0, 384 }
  0x15   :  { %s24_s24 = sshll.u32 %s3730_s23, 4  ;;  %p3632_p8 = scmp.ne.s32.totalorder %s4646_s0, %s3631_s27  ;;  %s25_s24 = int_to_ptr.vmem [resolvable:$true] %s24_s24 }
  0x16   :  { %p3635_p9 = scmp.lt.u32.totalorder %s3631_s27, %s4646_s0 }
  0x18   :  { %p3637_p10 = pnand %p3635_p9, %p3632_p8 }
  0x1a   :  { %3640 = shalt.err (!%p3637_p10)
}
  0x1b   :  { %s3641_s12 = scalar_lea.vmem %s25_s24, 384  ;;  %p3646_p12 = scmp.lt.s32.totalorder %s25_s24, %s25_s24 }
  0x1c   :  { %p3642_p11 = scmp.ne.s32.totalorder %s25_s24, %s3641_s12  ;;  %p3647_p13 = scmp.lt.s32.totalorder %s3641_s12, %s3641_s12 }
  0x1e   :  { %p3648_p0 = por %p3647_p13, %p3646_p12 }
  0x20   :  { %p3649_p1 = pnand %p3648_p0, %p3642_p11 }
  0x22   :  { %3652 = shalt.err (!%p3649_p1)
}
  0x23   :  { %s3731_s3 = smov 64   ;;  %s3732_s10 = smov 4  }
  0x24   :  { %30 = dma.hbm_to_vmem [thread:$0]  %s4646_s0, 384, %s25_s24, [#allocation6], %s3731_s3, %s3731_s3, %s3732_s10  }
  0x25   :  { %s3733_s15 = smov [#allocation10]   ;;  %s3653_s19 = scalar_lea.hbm %s4651_s5, 1024 }
  0x26   :  { %s54_s16 = sshll.u32 %s3733_s15, 4  ;;  %p3654_p2 = scmp.ne.s32.totalorder %s4651_s5, %s3653_s19  ;;  %s55_s16 = int_to_ptr.vmem [resolvable:$true] %s54_s16 }
  0x27   :  { %p3657_p3 = scmp.lt.u32.totalorder %s3653_s19, %s4651_s5 }
  0x29   :  { %p3659_p4 = pnand %p3657_p3, %p3654_p2 }
  0x2b   :  { %3662 = shalt.err (!%p3659_p4)
}
  0x2c   :  { %s3663_s25 = scalar_lea.vmem %s55_s16, 1024  ;;  %p3668_p6 = scmp.lt.s32.totalorder %s55_s16, %s55_s16 }
  0x2d   :  { %p3664_p5 = scmp.ne.s32.totalorder %s55_s16, %s3663_s25  ;;  %p3669_p7 = scmp.lt.s32.totalorder %s3663_s25, %s3663_s25 }
  0x2f   :  { %p3670_p8 = por %p3669_p7, %p3668_p6 }
  0x31   :  { %p3671_p9 = pnand %p3670_p8, %p3664_p5 }
  0x33   :  { %3674 = shalt.err (!%p3671_p9)
}
  0x34   :  { %60 = dma.hbm_to_vmem [thread:$0]  %s4651_s5, 1024, %s55_s16, [#allocation9], %s3731_s3, %s3731_s3, %s3732_s10  }
  0x35   :  { %3719 = dma.done.wait [#allocation6], 384  }
  0x36   :  { %3720 = vsyncadd [#allocation6], 4294966912 }
  0x37   :  { %3721 = dma.done.wait [#allocation9], 5120  }
  0x38   :  { %3722 = vsyncadd [#allocation9], 4294962176  ;;  %v4656_v0 = vmov 0   ;;  %v3397_v1 = vld [vmem:[%s4648_s2 + $0x4] ss:$16 sps:$4 sm:$0xff]   ;;  %vm183_vm0 = vcmask 130048   ;;  %v78_v45 = vlaneseq }
  0x39   :  { %219 = vmatprep.mubr.bf16.mxu1 %v4656_v0  ;;  %493 = vmatprep.mubr.bf16.mxu0 %v4656_v0  ;;  %v3399_v2 = vld [vmem:[%s4648_s2] ss:$16 sps:$4 sm:$0xff]   ;;  %v3844_v3 = vld [vmem:[%s4648_s2 + $0xc] ss:$16 sps:$4 sm:$0xff]   ;;  %v3849_v5 = vld [vmem:[%s4648_s2 + $0x8] ss:$16 sps:$4 sm:$0xff]  }
  0x3a   :  { %3395 = vset.pattern.permute.xlu0 %v4656_v0  ;;  %3396 = vset.pattern.permute.xlu1 %v4656_v0  ;;  %v136_v4 = vld [vmem:[#allocation5] sm:$0xf]  ;;  %v411_v6 = vld [vmem:[#allocation5 + $0x8] sm:$0xf]  ;;  %v548_v7 = vld [vmem:[#allocation5 + $0xc] sm:$0xf] }
  0x3b   :  { %187 = vmatprep.subr.bf16.mxu1 %v3397_v1  ;;  %461 = vmatprep.subr.bf16.mxu0 %v3397_v1  ;;  %v274_v8 = vld [vmem:[#allocation5 + $0x4] sm:$0xf]  ;;  %v685_v9 = vld [vmem:[#allocation5 + $0x10] sm:$0xf]  ;;  %v3862_v10 = vld [vmem:[#allocation8 + $0x4] ss:$16 sps:$4 sm:$0xff]  }
  0x3c   :  { %188 = vmatpush1.bf16.msra.mxu1 %v3399_v2  ;;  %462 = vmatpush1.bf16.msra.mxu0 %v3399_v2  ;;  %v3869_v11 = vld [vmem:[#allocation8] ss:$16 sps:$4 sm:$0xff]   ;;  %v822_v12 = vld [vmem:[#allocation5 + $0x14] sm:$0xf]  ;;  %v3873_v13 = vld [vmem:[#allocation8 + $0x24] ss:$16 sps:$4 sm:$0xff]  }
  0x3d   :  { %228 = vmatprep.subr.bf16.mxu1 %v3844_v3  ;;  %598 = vmatprep.subr.bf16.mxu0 %v3397_v1  ;;  %v77_v14 = vld [vmem:[%s4647_s1] sm:$0xff]  ;;  %v3878_v15 = vld [vmem:[#allocation8 + $0x20] ss:$16 sps:$4 sm:$0xff]   ;;  %v3882_v16 = vld [vmem:[#allocation8 + $0x44] ss:$16 sps:$4 sm:$0xff]   ;;  %v3735_v31 = vmov 0.0|0.0  }
  0x3e   :  { %1277 = vperm.xlu0 %3395, %v77_v14   ;;  %v3888_v17 = vld [vmem:[#allocation8 + $0x40] ss:$16 sps:$4 sm:$0xff]   ;;  %v3892_v18 = vld [vmem:[#allocation8 + $0x64] ss:$16 sps:$4 sm:$0xff]   ;;  %v3928_v27 = vld [vmem:[#allocation8 + $0xc] ss:$16 sps:$4 sm:$0xff]  }
  0x3f   :  { %3090 = vmatmul.mubr.msk.bf16.vlgmr.msra.gmra.mrb[0].mxu1 %vm183_vm0, %v136_v4  ;;  %3102 = vmatmul.mubr.msk.bf16.vlgmr.msra.gmra.mrb[0].mxu0 %vm183_vm0, %v411_v6  ;;  %v3896_v19 = vld [vmem:[#allocation8 + $0x60] ss:$16 sps:$4 sm:$0xff]   ;;  %v3899_v20 = vld [vmem:[#allocation8 + $0x84] ss:$16 sps:$4 sm:$0xff]   ;;  %4677 = vst [vmem:[#allocation18_spill] sm:$0xff] %v3928_v27  ;;  %v144_v46 = vshrl.u32 %v78_v45, 7 }
  0x40   :  { %229 = vmatpush1.bf16.msra.mxu1 %v3849_v5  ;;  %599 = vmatpush1.bf16.msra.mxu0 %v3399_v2  ;;  %v3907_v21 = vld [vmem:[#allocation8 + $0x80] ss:$16 sps:$4 sm:$0xff]   ;;  %v3910_v22 = vld [vmem:[#allocation8 + $0xa4] ss:$16 sps:$4 sm:$0xff]   ;;  %v3939_v29 = vld [vmem:[#allocation8 + $0x8] ss:$16 sps:$4 sm:$0xff]  }
  0x41   :  { %260 = vmatprep.mubr.bf16.mxu1 %v4656_v0  ;;  %630 = vmatprep.mubr.bf16.mxu0 %v4656_v0  ;;  %v3915_v23 = vld [vmem:[#allocation8 + $0xa0] ss:$16 sps:$4 sm:$0xff]   ;;  %v3919_v24 = vld [vmem:[#allocation8 + $0xc4] ss:$16 sps:$4 sm:$0xff]   ;;  %v3941_v30 = vld [vmem:[#allocation8 + $0x2c] ss:$16 sps:$4 sm:$0xff]  }
  0x42   :  { %324 = vmatprep.subr.bf16.mxu1 %v3397_v1  ;;  %735 = vmatprep.subr.bf16.mxu0 %v3397_v1  ;;  %v3923_v25 = vld [vmem:[#allocation8 + $0xc0] ss:$16 sps:$4 sm:$0xff]   ;;  %v3926_v26 = vld [vmem:[#allocation8 + $0xe4] ss:$16 sps:$4 sm:$0xff]   ;;  %v3946_v32 = vld [vmem:[#allocation8 + $0x28] ss:$16 sps:$4 sm:$0xff]  }
  0x43   :  { %v3933_v28 = vld [vmem:[#allocation8 + $0xe0] ss:$16 sps:$4 sm:$0xff]   ;;  %v3950_v33 = vld [vmem:[#allocation8 + $0x4c] ss:$16 sps:$4 sm:$0xff]   ;;  %v3956_v34 = vld [vmem:[#allocation8 + $0x48] ss:$16 sps:$4 sm:$0xff]  }
  0x44   :  { %v3959_v35 = vld [vmem:[#allocation8 + $0x6c] ss:$16 sps:$4 sm:$0xff]   ;;  %v3964_v36 = vld [vmem:[#allocation8 + $0x68] ss:$16 sps:$4 sm:$0xff]   ;;  %v4027_v48 = vsub.s32 1, %v144_v46  ;;  %v4029_v49 = vand.u32 127, %v78_v45 }
  0x45   :  { %v3967_v37 = vld [vmem:[#allocation8 + $0x8c] ss:$16 sps:$4 sm:$0xff]   ;;  %v3972_v38 = vld [vmem:[#allocation8 + $0x88] ss:$16 sps:$4 sm:$0xff]   ;;  %v4035_v53 = vsub.s32 0, %v144_v46  ;;  %vm3742_vm11 = vmmov 0  }
  0x46   :  { %v3975_v39 = vld [vmem:[#allocation8 + $0xac] ss:$16 sps:$4 sm:$0xff]   ;;  %v3980_v40 = vld [vmem:[#allocation8 + $0xa8] ss:$16 sps:$4 sm:$0xff]   ;;  %v81_v56 = vadd.s32 128, %v4029_v49  ;;  %vm80_vm1 = vcmp.lt.s32.totalorder %v4029_v49, 64 }
  0x47   :  { %3091 = vmatmul.mubr.msk.bf16.vlgmr.msra.gmra.mrb[4].mxu1 %vm183_vm0, %v136_v4  ;;  %3108 = vmatmul.mubr.msk.bf16.vlgmr.msra.gmra.mrb[4].mxu0 %vm183_vm0, %v548_v7  ;;  %v3983_v41 = vld [vmem:[#allocation8 + $0xcc] ss:$16 sps:$4 sm:$0xff]   ;;  %v3988_v42 = vld [vmem:[#allocation8 + $0xc8] ss:$16 sps:$4 sm:$0xff]   ;;  %vm3013_vm13 = vcmp.lt.s32.totalorder %v4029_v49, 24  ;;  %vm3042_vm15 = vcmask 7168  }
  0x48   :  { %325 = vmatpush1.bf16.msra.mxu1 %v3399_v2  ;;  %736 = vmatpush1.bf16.msra.mxu0 %v3399_v2  ;;  %v3991_v43 = vld [vmem:[#allocation8 + $0xec] ss:$16 sps:$4 sm:$0xff]   ;;  %v3996_v44 = vld [vmem:[#allocation8 + $0xe8] ss:$16 sps:$4 sm:$0xff]   ;;  %s3743_s0 = smov [#allocation11]  }
  0x49   :  { %356 = vmatprep.mubr.bf16.mxu1 %v4656_v0  ;;  %767 = vmatprep.mubr.bf16.mxu0 %v4656_v0  ;;  %v4025_v47 = vld [vmem:[%s4650_s4] sm:$0xf]  ;;  %s3062_s24 = sshll.u32 %s3743_s0, 4  ;;  %s3063_s24 = int_to_ptr.vmem [resolvable:$true] %s3062_s24 }
  0x4a   :  { %365 = vmatprep.subr.bf16.mxu1 %v3844_v3  ;;  %872 = vmatprep.subr.bf16.mxu0 %v3397_v1  ;;  %v425_v50 = vrot.slane %v4025_v47, %v4027_v48  ;;  %v4045_v60 = vld [vmem:[%s4650_s4] sm:$0xf]  ;;  %v421_v62 = vrot.slane %v4025_v47, %v4035_v53  ;;  %s3675_s26 = scalar_lea.vmem %s3063_s24, 128  ;;  %p3680_p11 = scmp.lt.s32.totalorder %s3063_s24, %s3063_s24 }
  0x4b   :  { %v558_v1 = vrot.slane %v4045_v60, %v4035_v53  ;;  %v279_v45 = vld [vmem:[%s4650_s4] sm:$0xf]  ;;  %p3676_p10 = scmp.ne.s32.totalorder %s3063_s24, %s3675_s26  ;;  %p3681_p12 = scmp.lt.s32.totalorder %s3675_s26, %s3675_s26 }
  0x4d   :  { %p3682_p13 = por %p3681_p12, %p3680_p11 }
  0x4f   :  { %3096 = vmatmul.mubr.msk.bf16.vlgmr.msra.gmra.mrb[8].mxu1 %vm183_vm0, %v274_v8  ;;  %3114 = vmatmul.mubr.msk.bf16.vlgmr.msra.gmra.mrb[8].mxu0 %vm183_vm0, %v685_v9  ;;  %p3683_p0 = pnand %p3682_p13, %p3676_p10 }
  0x50   :  { %366 = vmatpush1.bf16.msra.mxu1 %v3849_v5  ;;  %873 = vmatpush1.bf16.msra.mxu0 %v3399_v2  ;;  %v95_v2 = vand.u32 127, %v81_v56 }
  0x51   :  { %397 = vmatprep.mubr.bf16.mxu1 %v4656_v0  ;;  %904 = vmatprep.mubr.bf16.mxu0 %v4656_v0 }
  0x52   :  { %1164 = vmatprep.subr.bf16.mxu0 %v3862_v10  ;;  %502 = vmatprep.subr.bf16.mxu1 %v3844_v3  ;;  %vm4058_vm2 = vcmp.lt.s32.totalorder %v95_v2, 64 }
  0x57   :  { %3097 = vmatmul.mubr.msk.bf16.vlgmr.msra.gmra.mrb[12].mxu1 %vm183_vm0, %v274_v8  ;;  %3120 = vmatmul.mubr.msk.bf16.vlgmr.msra.gmra.mrb[12].mxu0 %vm183_vm0, %v822_v12 }
  0x58   :  { %1165 = vmatpush1.bf16.msra.mxu0 %v3869_v11  ;;  %503 = vmatpush1.bf16.msra.mxu1 %v3849_v5 }
  0x59   :  { %1166 = vmatprep.subr.bf16.mxu0 %v3873_v13  ;;  %534 = vmatprep.mubr.bf16.mxu1 %v4656_v0 }
  0x5a   :  { %639 = vmatprep.subr.bf16.mxu1 %v3844_v3  ;;  %1196 = vmatprep.mubr.bf16.mxu0 %v4656_v0 }
  0x5c   :  { %1167 = vmatpush1.bf16.msra.mxu0 %v3878_v15 }
  0x5d   :  { %1168 = vmatprep.subr.bf16.mxu0 %v3882_v16 }
  0x5f   :  { %3103 = vmatmul.mubr.msk.bf16.vlgmr.msra.gmra.mrb[16].mxu1 %vm183_vm0, %v411_v6 }
  0x60   :  { %1169 = vmatpush1.bf16.msra.mxu0 %v3888_v17  ;;  %640 = vmatpush1.bf16.msra.mxu1 %v3849_v5 }
  0x61   :  { %1170 = vmatprep.subr.bf16.mxu0 %v3892_v18  ;;  %671 = vmatprep.mubr.bf16.mxu1 %v4656_v0 }
  0x62   :  { %776 = vmatprep.subr.bf16.mxu1 %v3844_v3 }
  0x64   :  { %1171 = vmatpush1.bf16.msra.mxu0 %v3896_v19 }
  0x65   :  { %1172 = vmatprep.subr.bf16.mxu0 %v3899_v20 }
  0x67   :  { %3109 = vmatmul.mubr.msk.bf16.vlgmr.msra.gmra.mrb[20].mxu1 %vm183_vm0, %v548_v7 }
  0x68   :  { %1173 = vmatpush1.bf16.msra.mxu0 %v3907_v21  ;;  %777 = vmatpush1.bf16.msra.mxu1 %v3849_v5 }
  0x69   :  { %1174 = vmatprep.subr.bf16.mxu0 %v3910_v22  ;;  %808 = vmatprep.mubr.bf16.mxu1 %v4656_v0 }
  0x6a   :  { %913 = vmatprep.subr.bf16.mxu1 %v3844_v3  ;;  %v562_v3 = vrot.slane %v4045_v60, %v4027_v48 }
  0x6c   :  { %1175 = vmatpush1.bf16.msra.mxu0 %v3915_v23 }
  0x6d   :  { %1176 = vmatprep.subr.bf16.mxu0 %v3919_v24 }
  0x6f   :  { %3115 = vmatmul.mubr.msk.bf16.vlgmr.msra.gmra.mrb[24].mxu1 %vm183_vm0, %v685_v9 }
  0x70   :  { %1177 = vmatpush1.bf16.msra.mxu0 %v3923_v25  ;;  %914 = vmatpush1.bf16.msra.mxu1 %v3849_v5 }
  0x71   :  { %1178 = vmatprep.subr.bf16.mxu0 %v3926_v26  ;;  %945 = vmatprep.mubr.bf16.mxu1 %v4656_v0 }
  0x72   :  { %1205 = vmatprep.subr.bf16.mxu1 %v3928_v27 }
  0x74   :  { %1179 = vmatpush1.bf16.msra.mxu0 %v3933_v28 }
  0x75   :  { %1491 = vmatprep.subr.bf16.mxu0 %v3862_v10 }
  0x77   :  { %1197 = vmatmul.mubr.bf16.vlgmr.msra.gmra.mrb[16].mxu0 %v3735_v31  ;;  %3121 = vmatmul.mubr.msk.bf16.vlgmr.msra.gmra.mrb[28].mxu1 %vm183_vm0, %v822_v12 }
  0x78   :  { %1206 = vmatpush1.bf16.msra.mxu1 %v3939_v29  ;;  %1237 = vmatprep.mubr.bf16.mxu1 %v4656_v0 }
  0x79   :  { %1207 = vmatprep.subr.bf16.mxu1 %v3941_v30  ;;  %1492 = vmatpush1.bf16.msra.mxu0 %v3869_v11 }
  0x7a   :  { %1493 = vmatprep.subr.bf16.mxu0 %v3873_v13  ;;  %1523 = vmatprep.mubr.bf16.mxu0 %v4656_v0 }
  0x7c   :  { %1208 = vmatpush1.bf16.msra.mxu1 %v3946_v32 }
  0x7d   :  { %1209 = vmatprep.subr.bf16.mxu1 %v3950_v33  ;;  %1494 = vmatpush1.bf16.msra.mxu0 %v3878_v15 }
  0x7e   :  { %1495 = vmatprep.subr.bf16.mxu0 %v3882_v16 }
  0x80   :  { %1210 = vmatpush1.bf16.msra.mxu1 %v3956_v34 }
  0x81   :  { %1211 = vmatprep.subr.bf16.mxu1 %v3959_v35  ;;  %1496 = vmatpush1.bf16.msra.mxu0 %v3888_v17 }
  0x82   :  { %1497 = vmatprep.subr.bf16.mxu0 %v3892_v18 }
  0x84   :  { %1212 = vmatpush1.bf16.msra.mxu1 %v3964_v36 }
  0x85   :  { %1213 = vmatprep.subr.bf16.mxu1 %v3967_v37  ;;  %1498 = vmatpush1.bf16.msra.mxu0 %v3896_v19 }
  0x86   :  { %1499 = vmatprep.subr.bf16.mxu0 %v3899_v20 }
  0x88   :  { %1214 = vmatpush1.bf16.msra.mxu1 %v3972_v38 }
  0x89   :  { %1215 = vmatprep.subr.bf16.mxu1 %v3975_v39  ;;  %1500 = vmatpush1.bf16.msra.mxu0 %v3907_v21 }
  0x8a   :  { %1501 = vmatprep.subr.bf16.mxu0 %v3910_v22 }
  0x8c   :  { %1216 = vmatpush1.bf16.msra.mxu1 %v3980_v40 }
  0x8d   :  { %1217 = vmatprep.subr.bf16.mxu1 %v3983_v41  ;;  %1502 = vmatpush1.bf16.msra.mxu0 %v3915_v23 }
  0x8e   :  { %1503 = vmatprep.subr.bf16.mxu0 %v3919_v24 }
  0x90   :  { %1218 = vmatpush1.bf16.msra.mxu1 %v3988_v42 }
  0x91   :  { %1219 = vmatprep.subr.bf16.mxu1 %v3991_v43  ;;  %1504 = vmatpush1.bf16.msra.mxu0 %v3923_v25 }
  0x92   :  { %1505 = vmatprep.subr.bf16.mxu0 %v3926_v26 }
  0x94   :  { %1220 = vmatpush1.bf16.msra.mxu1 %v3996_v44 }
  0x95   :  { %1532 = vmatprep.subr.bf16.mxu1 %v3928_v27  ;;  %1506 = vmatpush1.bf16.msra.mxu0 %v3933_v28 }
  0x96   :  { %1815 = vmatprep.subr.bf16.mxu0 %v3862_v10 }
  0x97   :  { %1238 = vmatmul.mubr.bf16.vlgmr.msra.gmra.mrb[32].mxu1 %v3735_v31 }
  0x98   :  { %1533 = vmatpush1.bf16.msra.mxu1 %v3939_v29  ;;  %1564 = vmatprep.mubr.bf16.mxu1 %v4656_v0  ;;  %v4106_v0 = vld [vmem:[%s4650_s4] sm:$0xf] }
  0x99   :  { %1534 = vmatprep.subr.bf16.mxu1 %v3941_v30 }
  0x9c   :  { %1535 = vmatpush1.bf16.msra.mxu1 %v3946_v32 }
  0x9d   :  { %1536 = vmatprep.subr.bf16.mxu1 %v3950_v33 }
  0xa0   :  { %1537 = vmatpush1.bf16.msra.mxu1 %v3956_v34 }
  0xa1   :  { %1538 = vmatprep.subr.bf16.mxu1 %v3959_v35 }
  0xa4   :  { %1539 = vmatpush1.bf16.msra.mxu1 %v3964_v36 }
  0xa5   :  { %1540 = vmatprep.subr.bf16.mxu1 %v3967_v37 }
  0xa8   :  { %1541 = vmatpush1.bf16.msra.mxu1 %v3972_v38 }
  0xa9   :  { %1542 = vmatprep.subr.bf16.mxu1 %v3975_v39 }
  0xac   :  { %1543 = vmatpush1.bf16.msra.mxu1 %v3980_v40 }
  0xad   :  { %1544 = vmatprep.subr.bf16.mxu1 %v3983_v41 }
  0xb0   :  { %1545 = vmatpush1.bf16.msra.mxu1 %v3988_v42 }
  0xb1   :  { %1546 = vmatprep.subr.bf16.mxu1 %v3991_v43 }
  0xb4   :  { %1547 = vmatpush1.bf16.msra.mxu1 %v3996_v44 }
  0xb5   :  { %1856 = vmatprep.subr.bf16.mxu1 %v3928_v27 }
 0x112   :  { %v4033_v51 = vpop.f32.mrb[0].mxu1  ;;  %v495_v52 = vpop.f32.mrb[0].mxu0 }
 0x113   :  { %v4037_v54 = vpop.f32.mrb[1].mxu1  ;;  %v497_v55 = vpop.f32.mrb[1].mxu0  ;;  %v496_v4 = vadd.f32 %v495_v52, %v421_v62  ;;  %v284_v62 = vrot.slane %v279_v45, %v4035_v53 }
 0x114   :  { %v225_v57 = vpop.f32.mrb[2].mxu1  ;;  %v4040_v58 = vadd.f32 %v497_v55, %v425_v50  ;;  %v499_v59 = vpop.f32.mrb[2].mxu0  ;;  %v4070_v50 = vld [vmem:[%s4650_s4] sm:$0xf] }
 0x115   :  { %v226_v61 = vpop.f32.mrb[3].mxu1  ;;  %v500_v63 = vpop.f32.mrb[3].mxu0  ;;  %v699_v2 = vrot.slane %v4070_v50, %v4027_v48 }
 0x116   :  { %4678 = vst [vmem:[#allocation19_spill] sm:$0xff] %v4040_v58  ;;  %v695_v63 = vrot.slane %v4070_v50, %v4035_v53 }
 0x11a   :  { %v4053_v5 = vpop.f32.mrb[4].mxu1  ;;  %v632_v6 = vpop.f32.mrb[4].mxu0 }
 0x11b   :  { %v4056_v7 = vpop.f32.mrb[5].mxu1  ;;  %v633_v8 = vadd.f32 %v632_v6, %v558_v1  ;;  %v634_v9 = vpop.f32.mrb[5].mxu0  ;;  %v288_v1 = vrot.slane %v279_v45, %v4027_v48 }
 0x11c   :  { %v266_v12 = vpop.f32.mrb[6].mxu1  ;;  %v4062_v14 = vadd.f32 %v634_v9, %v562_v3  ;;  %v636_v31 = vpop.f32.mrb[6].mxu0 }
 0x11d   :  { %v267_v52 = vpop.f32.mrb[7].mxu1  ;;  %v637_v55 = vpop.f32.mrb[7].mxu0  ;;  %v4074_v56 = vsel %vm80_vm1, %v496_v4, %v633_v8  ;;  %v4078_v57 = vsel %vm80_vm1, %v633_v8, %v496_v4  ;;  %v4097_v31 = vld [vmem:[%s4650_s4] sm:$0xf] }
 0x11e   :  { %4681 = vst [vmem:[#allocation20_spill] sm:$0xff] %v4062_v14  ;;  %4682 = vst [vmem:[#allocation21_spill] sm:$0xff] %v4074_v56 }
 0x11f   :  { %4683 = vst [vmem:[#allocation22_spill] sm:$0xff] %v4078_v57 }
 0x122   :  { %v358_v3 = vpop.f32.mrb[8].mxu1  ;;  %v769_v4 = vpop.f32.mrb[8].mxu0 }
 0x123   :  { %v359_v6 = vadd.f32 %v358_v3, %v284_v62  ;;  %v770_v8 = vadd.f32 %v769_v4, %v695_v63  ;;  %v360_v9 = vpop.f32.mrb[9].mxu1  ;;  %v771_v12 = vpop.f32.mrb[9].mxu0  ;;  %v4108_v62 = vsub.s32 2, %v144_v46 }
 0x124   :  { %v4099_v52 = vadd.f32 %v360_v9, %v288_v1  ;;  %v4101_v55 = vadd.f32 %v771_v12, %v699_v2  ;;  %v362_v61 = vpop.f32.mrb[10].mxu1  ;;  %v773_v59 = vpop.f32.mrb[10].mxu0  ;;  %v4118_v2 = vsub.s32 3, %v144_v46  ;;  %v146_v9 = vrot.slane %v4097_v31, %v4035_v53 }
 0x125   :  { %v363_v63 = vpop.f32.mrb[11].mxu1  ;;  %v774_v3 = vpop.f32.mrb[11].mxu0  ;;  %v4112_v4 = vsel %vm80_vm1, %v359_v6, %v770_v8  ;;  %v4116_v1 = vsel %vm80_vm1, %v770_v8, %v359_v6  ;;  %v292_v12 = vrot.slane %v279_v45, %v4108_v62  ;;  %v832_v6 = vrot.slane %v4106_v0, %v4035_v53 }
 0x126   :  { %4684 = vst [vmem:[#allocation23_spill] sm:$0xff] %v4099_v52  ;;  %4685 = vst [vmem:[#allocation24_spill] sm:$0xff] %v4101_v55  ;;  %v150_v46 = vrot.slane %v4097_v31, %v4027_v48  ;;  %v296_v8 = vrot.slane %v279_v45, %v4118_v2  ;;  %v836_v63 = vrot.slane %v4106_v0, %v4027_v48 }
 0x127   :  { %4686 = vst [vmem:[#allocation25_spill] sm:$0xff] %v4112_v4  ;;  %4687 = vst [vmem:[#allocation26_spill] sm:$0xff] %v4116_v1  ;;  %v222_v61 = vadd.f32 %v4033_v51, %v146_v9  ;;  %v83_v9 = vadd.s32 384, %v4029_v49 }
 0x128   :  { %v4142_v56 = vadd.f32 %v4037_v54, %v150_v46 }
 0x12a   :  { %v399_v3 = vpop.f32.mrb[12].mxu1  ;;  %v906_v59 = vpop.f32.mrb[12].mxu0  ;;  %4688 = vst [vmem:[#allocation27_spill] sm:$0xff] %v4142_v56 }
 0x12b   :  { %v4139_v1 = vadd.f32 %v399_v3, %v292_v12  ;;  %v907_v57 = vadd.f32 %v906_v59, %v832_v6  ;;  %v401_v14 = vpop.f32.mrb[13].mxu1  ;;  %v908_v58 = vpop.f32.mrb[13].mxu0  ;;  %v109_v3 = vand.u32 127, %v83_v9 }
 0x12c   :  { %v4144_v53 = vadd.f32 %v401_v14, %v296_v8  ;;  %v4146_v55 = vadd.f32 %v908_v58, %v836_v63  ;;  %v403_v45 = vpop.f32.mrb[14].mxu1  ;;  %v910_v52 = vpop.f32.mrb[14].mxu0  ;;  %v429_v14 = vrot.slane %v4025_v47, %v4108_v62  ;;  %v566_v63 = vrot.slane %v4045_v60, %v4108_v62 }
 0x12d   :  { %v404_v4 = vpop.f32.mrb[15].mxu1  ;;  %v911_v48 = vpop.f32.mrb[15].mxu0  ;;  %v966_v27 = vsel %vm80_vm1, %v222_v61, %v907_v57  ;;  %v4152_v51 = vsel %vm80_vm1, %v907_v57, %v222_v61  ;;  %v433_v52 = vrot.slane %v4025_v47, %v4118_v2  ;;  %v82_v57 = vadd.s32 256, %v4029_v49 }
 0x12e   :  { %4689 = vst [vmem:[#allocation28_spill] sm:$0xff] %v4144_v53  ;;  %4690 = vst [vmem:[#allocation29_spill] sm:$0xff] %v4146_v55  ;;  %v967_v54 = vsel %vm4058_vm2, %v4142_v56, %v4146_v55  ;;  %v570_v47 = vrot.slane %v4045_v60, %v4118_v2  ;;  %vm4182_vm4 = vcmp.lt.s32.totalorder %v109_v3, 64  ;;  %v707_v3 = vrot.slane %v4070_v50, %v4118_v2 }
 0x12f   :  { %4691 = vst [vmem:[#allocation30_spill] sm:$0xff] %v4152_v51  ;;  %v102_v8 = vand.u32 127, %v82_v57 }
 0x131   :  { %vm4176_vm3 = vcmp.lt.s32.totalorder %v102_v8, 64 }
 0x132   :  { %v536_v4 = vpop.f32.mrb[16].mxu1 }
 0x133   :  { %v4167_v59 = vadd.f32 %v536_v4, %v429_v14  ;;  %v538_v61 = vpop.f32.mrb[17].mxu1 }
 0x134   :  { %v4170_v12 = vadd.f32 %v538_v61, %v433_v52  ;;  %v540_v6 = vpop.f32.mrb[18].mxu1 }
 0x135   :  { %v541_v46 = vpop.f32.mrb[19].mxu1 }
 0x13a   :  { %v673_v45 = vpop.f32.mrb[20].mxu1 }
 0x13b   :  { %v4180_v14 = vadd.f32 %v673_v45, %v566_v63  ;;  %v675_v4 = vpop.f32.mrb[21].mxu1  ;;  %v703_v63 = vrot.slane %v4070_v50, %v4108_v62 }
 0x13c   :  { %v4186_v57 = vadd.f32 %v675_v4, %v570_v47  ;;  %v677_v61 = vpop.f32.mrb[22].mxu1 }
 0x13d   :  { %v678_v6 = vpop.f32.mrb[23].mxu1 }
 0x13e   :  { %4696 = vst [vmem:[#allocation31_spill] sm:$0xff] %v4186_v57 }
 0x142   :  { %v810_v47 = vpop.f32.mrb[24].mxu1 }
 0x143   :  { %v4208_v45 = vadd.f32 %v810_v47, %v703_v63  ;;  %v812_v4 = vpop.f32.mrb[25].mxu1  ;;  %v154_v63 = vrot.slane %v4097_v31, %v4108_v62  ;;  %v158_v47 = vrot.slane %v4097_v31, %v4118_v2 }
 0x144   :  { %v4210_v61 = vadd.f32 %v812_v4, %v707_v3  ;;  %v814_v6 = vpop.f32.mrb[26].mxu1  ;;  %v840_v3 = vrot.slane %v4106_v0, %v4108_v62  ;;  %v844_v4 = vrot.slane %v4106_v0, %v4118_v2 }
 0x145   :  { %v815_v58 = vpop.f32.mrb[27].mxu1  ;;  %v4237_v46 = vadd.f32 %v4053_v5, %v154_v63  ;;  %v4242_v56 = vadd.f32 %v4056_v7, %v158_v47 }
 0x146   :  { %4697 = vst [vmem:[#allocation32_spill] sm:$0xff] %v4210_v61 }
 0x147   :  { %4698 = vst [vmem:[#allocation33_spill] sm:$0xff] %v4237_v46  ;;  %4700 = vst [vmem:[#allocation35_spill] sm:$0xff] %v4242_v56 }
 0x14a   :  { %v1198_v6 = vpop.f32.mrb[16].mxu0  ;;  %v947_v8 = vpop.f32.mrb[28].mxu1 }
 0x14b   :  { %v1246_v60 = vadd.f32 %v1198_v6, %v966_v27  ;;  %v4239_v50 = vadd.f32 %v947_v8, %v840_v3  ;;  %v1200_v58 = vpop.f32.mrb[17].mxu0  ;;  %v949_v9 = vpop.f32.mrb[29].mxu1 }
 0x14c   :  { %v1247_v62 = vadd.f32 %v1200_v58, %v967_v54  ;;  %v4244_v55 = vadd.f32 %v949_v9, %v844_v4  ;;  %v951_v31 = vpop.f32.mrb[30].mxu1  ;;  %v1202_v51 = vpop.f32.mrb[18].mxu0 }
 0x14d   :  { %4699 = vst [vmem:[#allocation34_spill] sm:$0xff] %v4239_v50  ;;  %v952_v57 = vpop.f32.mrb[31].mxu1  ;;  %v1203_v0 = vpop.f32.mrb[19].mxu0  ;;  %v968_v5 = vsel %vm4176_vm3, %v4237_v46, %v4239_v50  ;;  %v3154_v54 = vmul.f32 -1.442695, %v1246_v60 }
 0x14e   :  { %4701 = vst [vmem:[#allocation36_spill] sm:$0xff] %v4244_v55  ;;  %v969_v7 = vsel %vm4182_vm4, %v4242_v56, %v4244_v55  ;;  %v3155_v51 = vmul.f32 -1.442695, %v1247_v62 }
 0x150   :  { %3507 = vpow2.f32 %v3155_v51 }
 0x151   :  { %3509 = vpow2.f32 %v3154_v54 }
 0x15a   :  { %v3508_v57 = vpop.eup %3507 }
 0x15b   :  { %v3510_v9 = vpop.eup %3509  ;;  %v1259_v8 = vadd.f32 1.0, %v3508_v57 }
 0x15c   :  { %v1253_v58 = vadd.f32 1.0, %v3510_v9 }
 0x15d   :  { %3511 = vrcp.f32 %v1259_v8 }
 0x15e   :  { %3513 = vrcp.f32 %v1253_v58 }
 0x167   :  { %v3512_v2 = vpop.eup %3511 }
 0x168   :  { %v3514_v62 = vpop.eup %3513  ;;  %v1270_v51 = vmul.f32 0.0, %v3512_v2  ;;  %v4702_v2 = vmov 0  }
 0x16a   :  { %v1239_v63 = vpop.f32.mrb[32].mxu1 }
 0x16b   :  { %v1248_v3 = vadd.f32 %v1239_v63, %v968_v5  ;;  %v1241_v47 = vpop.f32.mrb[33].mxu1  ;;  %v4265_v5 = vpop.permute.xlu0 %1277 }
 0x16c   :  { %v1249_v4 = vadd.f32 %v1241_v47, %v969_v7  ;;  %v1243_v6 = vpop.f32.mrb[34].mxu1  ;;  %v3736_v7 = vmov 5  }
 0x16d   :  { %3515 = vtanh.f32 %v1248_v3  ;;  %v1244_v31 = vpop.f32.mrb[35].mxu1  ;;  %v4269_v9 = vsel %vm80_vm1, 0, %v3736_v7  ;;  %v3737_v7 = vmov 4  }
 0x16e   :  { %v3156_v0 = vmul.f32 -1.442695, %v1249_v4  ;;  %vm1279_vm5 = vcmp.lt.s32.totalorder %v4269_v9, %v4265_v5  ;;  %v4356_v9 = vld [vmem:[#allocation8 + $0x4] ss:$16 sps:$4 sm:$0xff]  }
 0x16f   :  { %vm3340_vm6 = vmpackc.low %vm1279_vm5, %vm1279_vm5 }
 0x170   :  { %3517 = vpow2.f32 %v3156_v0 }
 0x177   :  { %v3516_v60 = vpop.eup %3515 }
 0x178   :  { %v1271_v54 = vmul.f32 %v3516_v60, %v3514_v62 }
 0x17a   :  { %v3518_v27 = vpop.eup %3517  ;;  %v4262_v56 = vadd.f32 %v1271_v54, %v1270_v51 }
 0x17b   :  { %v1266_v57 = vadd.f32 1.0, %v3518_v27 }
 0x17c   :  { %3519 = vtanh.f32 %v4262_v56  ;;  %v1280_v60 = vsel %vm1279_vm5, %v4262_v56, 0.0 }
 0x17d   :  { %3521 = vrcp.f32 %v1266_v57 }
 0x186   :  { %v3520_v8 = vpop.eup %3519 }
 0x187   :  { %v3522_v58 = vpop.eup %3521 }
 0x188   :  { %v4271_v63 = vmul.f32 %v3522_v58, %v3520_v8  ;;  %v1602_v8 = vsel %vm80_vm1, 1, %v3737_v7  ;;  %v4715_v7 = vld [vmem:[#allocation31_spill] sm:$0xff] }
 0x189   :  { %vm1603_vm7 = vcmp.lt.s32.totalorder %v1602_v8, %v4265_v5  ;;  %v4716_v8 = vsel %vm4182_vm4, %v4170_v12, %v4715_v7 }
 0x18a   :  { %v3341_v27 = vpack.c.bf16 %v4271_v63, %v4271_v63  ;;  %v1283_v56 = vsel %vm1279_vm5, %v4271_v63, 0.0  ;;  %v4358_v63 = vld [vmem:[#allocation8] ss:$16 sps:$4 sm:$0xff]  }
 0x18c   :  { %3342 = vmatmul.mubr.msk.bf16.vlgmr.msra.gmra.mrb[20].mxu0 %vm3340_vm6, %v3341_v27  ;;  %3345 = vmatmul.mubr.msk.bf16.vlgmr.msra.gmra.mrb[36].mxu1 %vm3340_vm6, %v3341_v27 }
 0x18d   :  { %1816 = vmatpush1.bf16.msra.mxu0 %v3869_v11  ;;  %1857 = vmatpush1.bf16.msra.mxu1 %v3939_v29  ;;  %v4703_v11 = vld [vmem:[#allocation18_spill] sm:$0xff] }
 0x18e   :  { %1817 = vmatprep.subr.bf16.mxu0 %v3873_v13  ;;  %1858 = vmatprep.subr.bf16.mxu1 %v3941_v30 }
 0x18f   :  { %1847 = vmatprep.mubr.bf16.mxu0 %v4702_v2  ;;  %1888 = vmatprep.mubr.bf16.mxu1 %v4702_v2 }
 0x191   :  { %1818 = vmatpush1.bf16.msra.mxu0 %v3878_v15  ;;  %1859 = vmatpush1.bf16.msra.mxu1 %v3946_v32 }
 0x192   :  { %1819 = vmatprep.subr.bf16.mxu0 %v3882_v16  ;;  %1860 = vmatprep.subr.bf16.mxu1 %v3950_v33  ;;  %v4704_v16 = vld [vmem:[#allocation25_spill] sm:$0xff] }
 0x195   :  { %1820 = vmatpush1.bf16.msra.mxu0 %v3888_v17  ;;  %1861 = vmatpush1.bf16.msra.mxu1 %v3956_v34 }
 0x196   :  { %1821 = vmatprep.subr.bf16.mxu0 %v3892_v18  ;;  %1862 = vmatprep.subr.bf16.mxu1 %v3959_v35  ;;  %v4705_v18 = vsel %vm4176_vm3, %v4139_v1, %v4208_v45 }
 0x199   :  { %1822 = vmatpush1.bf16.msra.mxu0 %v3896_v19  ;;  %1863 = vmatpush1.bf16.msra.mxu1 %v3964_v36 }
 0x19a   :  { %1823 = vmatprep.subr.bf16.mxu0 %v3899_v20  ;;  %1864 = vmatprep.subr.bf16.mxu1 %v3967_v37 }
 0x19d   :  { %1824 = vmatpush1.bf16.msra.mxu0 %v3907_v21  ;;  %1865 = vmatpush1.bf16.msra.mxu1 %v3972_v38 }
 0x19e   :  { %1825 = vmatprep.subr.bf16.mxu0 %v3910_v22  ;;  %1866 = vmatprep.subr.bf16.mxu1 %v3975_v39  ;;  %v4706_v22 = vld [vmem:[#allocation23_spill] sm:$0xff] }
 0x1a1   :  { %1826 = vmatpush1.bf16.msra.mxu0 %v3915_v23  ;;  %1867 = vmatpush1.bf16.msra.mxu1 %v3980_v40  ;;  %v4707_v23 = vld [vmem:[#allocation24_spill] sm:$0xff] }
 0x1a2   :  { %1827 = vmatprep.subr.bf16.mxu0 %v3919_v24  ;;  %1868 = vmatprep.subr.bf16.mxu1 %v3983_v41  ;;  %v4708_v24 = vsel %vm4058_vm2, %v4706_v22, %v4707_v23 }
 0x1a5   :  { %1828 = vmatpush1.bf16.msra.mxu0 %v3923_v25  ;;  %1869 = vmatpush1.bf16.msra.mxu1 %v3988_v42 }
 0x1a6   :  { %1829 = vmatprep.subr.bf16.mxu0 %v3926_v26  ;;  %1870 = vmatprep.subr.bf16.mxu1 %v3991_v43  ;;  %v4709_v26 = vsel %vm4182_vm4, %v4144_v53, %v4210_v61 }
 0x1a9   :  { %1830 = vmatpush1.bf16.msra.mxu0 %v3933_v28  ;;  %1871 = vmatpush1.bf16.msra.mxu1 %v3996_v44 }
 0x1aa   :  { %2180 = vmatprep.subr.bf16.mxu1 %v4703_v11  ;;  %2139 = vmatprep.subr.bf16.mxu0 %v4356_v9 }
 0x25f   :  { %v1525_v13 = vpop.f32.mrb[20].mxu0  ;;  %v1566_v15 = vpop.f32.mrb[36].mxu1 }
 0x260   :  { %v1573_v17 = vadd.f32 %v1525_v13, %v4704_v16  ;;  %v1575_v19 = vadd.f32 %v1566_v15, %v4705_v18  ;;  %v1527_v20 = vpop.f32.mrb[21].mxu0  ;;  %v1568_v21 = vpop.f32.mrb[37].mxu1  ;;  %v4381_v18 = vld [vmem:[#allocation8 + $0x88] ss:$16 sps:$4 sm:$0xff]  }
 0x261   :  { %v1574_v25 = vadd.f32 %v1527_v20, %v4708_v24  ;;  %v1576_v28 = vadd.f32 %v1568_v21, %v4709_v26  ;;  %v1529_v37 = vpop.f32.mrb[22].mxu0  ;;  %v1570_v38 = vpop.f32.mrb[38].mxu1  ;;  %v4386_v20 = vld [vmem:[#allocation8 + $0x80] ss:$16 sps:$4 sm:$0xff]   ;;  %v4388_v21 = vld [vmem:[#allocation8 + $0xac] ss:$16 sps:$4 sm:$0xff]  }
 0x262   :  { %v3189_v39 = vmul.f32 -1.442695, %v1573_v17  ;;  %v1530_v40 = vpop.f32.mrb[23].mxu0  ;;  %v1571_v41 = vpop.f32.mrb[39].mxu1  ;;  %v4392_v24 = vld [vmem:[#allocation8 + $0xa4] ss:$16 sps:$4 sm:$0xff]  }
 0x263   :  { %v3190_v42 = vmul.f32 -1.442695, %v1574_v25  ;;  %v3191_v43 = vmul.f32 -1.442695, %v1576_v28  ;;  %v4395_v25 = vld [vmem:[#allocation8 + $0xa8] ss:$16 sps:$4 sm:$0xff]  }
 0x264   :  { %3523 = vpow2.f32 %v3189_v39  ;;  %v4398_v26 = vld [vmem:[#allocation8 + $0xcc] ss:$16 sps:$4 sm:$0xff]   ;;  %v4401_v28 = vld [vmem:[#allocation8 + $0xa0] ss:$16 sps:$4 sm:$0xff]   ;;  %v4404_v37 = vld [vmem:[#allocation8 + $0xc4] ss:$16 sps:$4 sm:$0xff]  }
 0x265   :  { %3525 = vpow2.f32 %v3190_v42  ;;  %v4407_v38 = vld [vmem:[#allocation8 + $0xc8] ss:$16 sps:$4 sm:$0xff]   ;;  %v4410_v39 = vld [vmem:[#allocation8 + $0xec] ss:$16 sps:$4 sm:$0xff]   ;;  %v4413_v40 = vld [vmem:[#allocation8 + $0xc0] ss:$16 sps:$4 sm:$0xff]  }
 0x266   :  { %3527 = vpow2.f32 %v3191_v43  ;;  %v4416_v41 = vld [vmem:[#allocation8 + $0xe4] ss:$16 sps:$4 sm:$0xff]   ;;  %v4419_v42 = vld [vmem:[#allocation8 + $0xe8] ss:$16 sps:$4 sm:$0xff]   ;;  %v4423_v43 = vld [vmem:[#allocation8 + $0xe0] ss:$16 sps:$4 sm:$0xff]  }
 0x267   :  { %3529 = vtanh.f32 %v1575_v19  ;;  %v4383_v19 = vld [vmem:[#allocation8 + $0x8c] ss:$16 sps:$4 sm:$0xff]  }
 0x26e   :  { %v3524_v44 = vpop.eup %3523 }
 0x26f   :  { %v3526_v3 = vpop.eup %3525  ;;  %v1580_v47 = vadd.f32 1.0, %v3524_v44 }
 0x270   :  { %v1586_v4 = vadd.f32 1.0, %v3526_v3  ;;  %v3528_v6 = vpop.eup %3527 }
 0x271   :  { %3531 = vrcp.f32 %v1580_v47  ;;  %v3530_v31 = vpop.eup %3529  ;;  %v1593_v54 = vadd.f32 1.0, %v3528_v6  ;;  %v4710_v47 = vld [vmem:[#allocation21_spill] sm:$0xff]  ;;  %v4711_v6 = vsel %vm4176_vm3, %v4167_v59, %v4180_v14 }
 0x272   :  { %3533 = vrcp.f32 %v1586_v4 }
 0x273   :  { %3535 = vrcp.f32 %v1593_v54 }
 0x27b   :  { %v3532_v0 = vpop.eup %3531 }
 0x27c   :  { %v3534_v62 = vpop.eup %3533  ;;  %v1598_v51 = vmul.f32 %v3532_v0, %v3530_v31 }
 0x27d   :  { %v1597_v57 = vmul.f32 %v3534_v62, %v1280_v60  ;;  %v3536_v11 = vpop.eup %3535 }
 0x27f   :  { %v1599_v58 = vadd.f32 %v1598_v51, %v1597_v57  ;;  %v4713_v51 = vld [vmem:[#allocation20_spill] sm:$0xff] }
 0x281   :  { %3537 = vtanh.f32 %v1599_v58  ;;  %v4337_v27 = vsel %vm1603_vm7, %v1599_v58, %v1280_v60  ;;  %v4712_v60 = vld [vmem:[#allocation19_spill] sm:$0xff] }
 0x282   :  { %v4714_v54 = vsel %vm4058_vm2, %v4712_v60, %v4713_v51 }
 0x28b   :  { %v3538_v13 = vpop.eup %3537 }
 0x28c   :  { %v1601_v15 = vmul.f32 %v3538_v13, %v3536_v11 }
 0x28e   :  { %v4343_v16 = vsel %vm1603_vm7, %v1601_v15, %v1283_v56 }
 0x28f   :  { %v1622_v17 = vpack.c.bf16 %v4343_v16, %v4343_v16 }
 0x291   :  { %1848 = vmatmul.mubr.bf16.vlgmr.msra.gmra.mrb[24].mxu0 %v1622_v17  ;;  %1889 = vmatmul.mubr.bf16.vlgmr.msra.gmra.mrb[40].mxu1 %v1622_v17 }
 0x292   :  { %2181 = vmatpush1.bf16.msra.mxu1 %v3939_v29  ;;  %2171 = vmatprep.mubr.bf16.mxu0 %v4702_v2  ;;  %v4362_v29 = vld [vmem:[#allocation8 + $0x24] ss:$16 sps:$4 sm:$0xff]  }
 0x293   :  { %2182 = vmatprep.subr.bf16.mxu1 %v3941_v30  ;;  %2212 = vmatprep.mubr.bf16.mxu1 %v4702_v2  ;;  %v4364_v30 = vld [vmem:[#allocation8 + $0x20] ss:$16 sps:$4 sm:$0xff]  }
 0x294   :  { %2140 = vmatpush1.bf16.msra.mxu0 %v4358_v63 }
 0x295   :  { %2141 = vmatprep.subr.bf16.mxu0 %v4362_v29 }
 0x296   :  { %2183 = vmatpush1.bf16.msra.mxu1 %v3946_v32  ;;  %v4368_v32 = vld [vmem:[#allocation8 + $0x44] ss:$16 sps:$4 sm:$0xff]  }
 0x297   :  { %2184 = vmatprep.subr.bf16.mxu1 %v3950_v33  ;;  %v4370_v33 = vld [vmem:[#allocation8 + $0x40] ss:$16 sps:$4 sm:$0xff]  }
 0x298   :  { %2142 = vmatpush1.bf16.msra.mxu0 %v4364_v30 }
 0x299   :  { %2143 = vmatprep.subr.bf16.mxu0 %v4368_v32 }
 0x29a   :  { %2185 = vmatpush1.bf16.msra.mxu1 %v3956_v34  ;;  %v4374_v34 = vld [vmem:[#allocation8 + $0x64] ss:$16 sps:$4 sm:$0xff]  }
 0x29b   :  { %2186 = vmatprep.subr.bf16.mxu1 %v3959_v35  ;;  %v4376_v35 = vld [vmem:[#allocation8 + $0x60] ss:$16 sps:$4 sm:$0xff]  }
 0x29c   :  { %2144 = vmatpush1.bf16.msra.mxu0 %v4370_v33 }
 0x29d   :  { %2145 = vmatprep.subr.bf16.mxu0 %v4374_v34 }
 0x29e   :  { %2187 = vmatpush1.bf16.msra.mxu1 %v3964_v36  ;;  %v4378_v36 = vld [vmem:[#allocation8 + $0x84] ss:$16 sps:$4 sm:$0xff]  }
 0x29f   :  { %2188 = vmatprep.subr.bf16.mxu1 %v4383_v19 }
 0x2a0   :  { %2146 = vmatpush1.bf16.msra.mxu0 %v4376_v35 }
 0x2a1   :  { %2147 = vmatprep.subr.bf16.mxu0 %v4378_v36 }
 0x2a2   :  { %2189 = vmatpush1.bf16.msra.mxu1 %v4381_v18 }
 0x2a3   :  { %2190 = vmatprep.subr.bf16.mxu1 %v4388_v21 }
 0x2a4   :  { %2148 = vmatpush1.bf16.msra.mxu0 %v4386_v20 }
 0x2a5   :  { %2149 = vmatprep.subr.bf16.mxu0 %v4392_v24 }
 0x2a6   :  { %2191 = vmatpush1.bf16.msra.mxu1 %v4395_v25 }
 0x2a7   :  { %2192 = vmatprep.subr.bf16.mxu1 %v4398_v26 }
 0x2a8   :  { %2150 = vmatpush1.bf16.msra.mxu0 %v4401_v28 }
 0x2a9   :  { %2151 = vmatprep.subr.bf16.mxu0 %v4404_v37 }
 0x2aa   :  { %2193 = vmatpush1.bf16.msra.mxu1 %v4407_v38 }
 0x2ab   :  { %2194 = vmatprep.subr.bf16.mxu1 %v4410_v39 }
 0x2ac   :  { %2152 = vmatpush1.bf16.msra.mxu0 %v4413_v40 }
 0x2ad   :  { %2153 = vmatprep.subr.bf16.mxu0 %v4416_v41 }
 0x2ae   :  { %2195 = vmatpush1.bf16.msra.mxu1 %v4419_v42 }
 0x2b0   :  { %2154 = vmatpush1.bf16.msra.mxu0 %v4423_v43 }
 0x2b1   :  { %2463 = vmatprep.subr.bf16.mxu0 %v4356_v9 }
 0x364   :  { %v1849_v44 = vpop.f32.mrb[24].mxu0  ;;  %v1890_v3 = vpop.f32.mrb[40].mxu1 }
 0x365   :  { %v1897_v4 = vadd.f32 %v1849_v44, %v4710_v47  ;;  %v1899_v31 = vadd.f32 %v1890_v3, %v4711_v6  ;;  %v1851_v0 = vpop.f32.mrb[25].mxu0  ;;  %v1892_v62 = vpop.f32.mrb[41].mxu1 }
 0x366   :  { %v1898_v57 = vadd.f32 %v1851_v0, %v4714_v54  ;;  %v1900_v58 = vadd.f32 %v1892_v62, %v4716_v8  ;;  %v1853_v11 = vpop.f32.mrb[26].mxu0  ;;  %v1894_v13 = vpop.f32.mrb[42].mxu1 }
 0x367   :  { %v3224_v15 = vmul.f32 -1.442695, %v1897_v4  ;;  %v1854_v56 = vpop.f32.mrb[27].mxu0  ;;  %v1895_v17 = vpop.f32.mrb[43].mxu1 }
 0x368   :  { %v3225_v44 = vmul.f32 -1.442695, %v1898_v57  ;;  %v3226_v3 = vmul.f32 -1.442695, %v1900_v58  ;;  %v3738_v57 = vmov 3  }
 0x369   :  { %3539 = vpow2.f32 %v3224_v15  ;;  %v1926_v58 = vsel %vm80_vm1, 2, %v3738_v57 }
 0x36a   :  { %3541 = vpow2.f32 %v3225_v44  ;;  %vm1927_vm8 = vcmp.lt.s32.totalorder %v1926_v58, %v4265_v5 }
 0x36b   :  { %3543 = vpow2.f32 %v3226_v3  ;;  %v4478_v3 = vld [vmem:[#allocation8 + $0x2c] ss:$16 sps:$4 sm:$0xff]  }
 0x36c   :  { %3545 = vtanh.f32 %v1899_v31 }
 0x373   :  { %v3540_v47 = vpop.eup %3539 }
 0x374   :  { %v3542_v6 = vpop.eup %3541  ;;  %v1904_v55 = vadd.f32 1.0, %v3540_v47  ;;  %v4480_v47 = vld [vmem:[#allocation8 + $0x28] ss:$16 sps:$4 sm:$0xff]  }
 0x375   :  { %v1910_v0 = vadd.f32 1.0, %v3542_v6  ;;  %v3544_v54 = vpop.eup %3543  ;;  %v4484_v6 = vld [vmem:[#allocation8 + $0x4c] ss:$16 sps:$4 sm:$0xff]  }
 0x376   :  { %3547 = vrcp.f32 %v1904_v55  ;;  %v3546_v46 = vpop.eup %3545  ;;  %v1917_v4 = vadd.f32 1.0, %v3544_v54  ;;  %v4492_v54 = vld [vmem:[#allocation8 + $0x68] ss:$16 sps:$4 sm:$0xff]  }
 0x377   :  { %3549 = vrcp.f32 %v1910_v0  ;;  %v4486_v0 = vld [vmem:[#allocation8 + $0x48] ss:$16 sps:$4 sm:$0xff]  }
 0x378   :  { %3551 = vrcp.f32 %v1917_v4 }
 0x380   :  { %v3548_v62 = vpop.eup %3547 }
 0x381   :  { %v3550_v8 = vpop.eup %3549  ;;  %v1922_v11 = vmul.f32 %v3548_v62, %v3546_v46 }
 0x382   :  { %v1921_v13 = vmul.f32 %v3550_v8, %v4337_v27  ;;  %v3552_v31 = vpop.eup %3551 }
 0x384   :  { %v1923_v15 = vadd.f32 %v1922_v11, %v1921_v13  ;;  %v4717_v11 = vld [vmem:[#allocation22_spill] sm:$0xff]  ;;  %v4718_v13 = vsel %vm4176_vm3, %v4180_v14, %v4167_v59 }
 0x386   :  { %3553 = vtanh.f32 %v1923_v15  ;;  %v4450_v55 = vsel %vm1927_vm8, %v1923_v15, %v4337_v27  ;;  %v3489_v27 = vld [vmem:[#allocation8 + $0xc] ss:$16 sps:$4 sm:$0xff]  }
 0x387   :  { %2504 = vmatprep.subr.bf16.mxu1 %v3489_v27 }
 0x390   :  { %v3554_v56 = vpop.eup %3553 }
 0x391   :  { %v1925_v17 = vmul.f32 %v3554_v56, %v3552_v31  ;;  %v4719_v31 = vsel %vm4058_vm2, %v4713_v51, %v4712_v60 }
 0x393   :  { %v4453_v46 = vsel %vm1927_vm8, %v1925_v17, %v4343_v16  ;;  %v4475_v16 = vld [vmem:[#allocation8 + $0x8] ss:$16 sps:$4 sm:$0xff]   ;;  %v4720_v17 = vsel %vm4182_vm4, %v4715_v7, %v4170_v12 }
 0x394   :  { %v1946_v44 = vpack.c.bf16 %v4453_v46, %v4453_v46 }
 0x396   :  { %2172 = vmatmul.mubr.bf16.vlgmr.msra.gmra.mrb[28].mxu0 %v1946_v44  ;;  %2213 = vmatmul.mubr.bf16.vlgmr.msra.gmra.mrb[44].mxu1 %v1946_v44 }
 0x397   :  { %2464 = vmatpush1.bf16.msra.mxu0 %v4358_v63  ;;  %2495 = vmatprep.mubr.bf16.mxu0 %v4702_v2 }
 0x398   :  { %2465 = vmatprep.subr.bf16.mxu0 %v4362_v29  ;;  %2536 = vmatprep.mubr.bf16.mxu1 %v4702_v2 }
 0x399   :  { %2505 = vmatpush1.bf16.msra.mxu1 %v4475_v16 }
 0x39a   :  { %2506 = vmatprep.subr.bf16.mxu1 %v4478_v3 }
 0x39b   :  { %2466 = vmatpush1.bf16.msra.mxu0 %v4364_v30 }
 0x39c   :  { %2467 = vmatprep.subr.bf16.mxu0 %v4368_v32 }
 0x39d   :  { %2507 = vmatpush1.bf16.msra.mxu1 %v4480_v47 }
 0x39e   :  { %2508 = vmatprep.subr.bf16.mxu1 %v4484_v6 }
 0x39f   :  { %2468 = vmatpush1.bf16.msra.mxu0 %v4370_v33 }
 0x3a0   :  { %2469 = vmatprep.subr.bf16.mxu0 %v4374_v34 }
 0x3a1   :  { %2509 = vmatpush1.bf16.msra.mxu1 %v4486_v0 }
 0x3a3   :  { %2470 = vmatpush1.bf16.msra.mxu0 %v4376_v35 }
 0x3a4   :  { %2471 = vmatprep.subr.bf16.mxu0 %v4378_v36 }
 0x3a7   :  { %2472 = vmatpush1.bf16.msra.mxu0 %v4386_v20 }
 0x3a8   :  { %2473 = vmatprep.subr.bf16.mxu0 %v4392_v24 }
 0x3ab   :  { %2474 = vmatpush1.bf16.msra.mxu0 %v4401_v28 }
 0x3ac   :  { %2475 = vmatprep.subr.bf16.mxu0 %v4404_v37 }
 0x3af   :  { %2476 = vmatpush1.bf16.msra.mxu0 %v4413_v40 }
 0x3b0   :  { %2477 = vmatprep.subr.bf16.mxu0 %v4416_v41 }
 0x3b3   :  { %2478 = vmatpush1.bf16.msra.mxu0 %v4423_v43 }
 0x3b4   :  { %2787 = vmatprep.subr.bf16.mxu0 %v4356_v9  ;;  %v4490_v9 = vld [vmem:[#allocation8 + $0x6c] ss:$16 sps:$4 sm:$0xff]  }
 0x3b5   :  { %2510 = vmatprep.subr.bf16.mxu1 %v4490_v9 }
 0x3b6   :  { %2511 = vmatpush1.bf16.msra.mxu1 %v4492_v54 }
 0x3b7   :  { %2512 = vmatprep.subr.bf16.mxu1 %v4383_v19 }
 0x3ba   :  { %2513 = vmatpush1.bf16.msra.mxu1 %v4381_v18 }
 0x3bb   :  { %2514 = vmatprep.subr.bf16.mxu1 %v4388_v21 }
 0x3be   :  { %2515 = vmatpush1.bf16.msra.mxu1 %v4395_v25 }
 0x3bf   :  { %2516 = vmatprep.subr.bf16.mxu1 %v4398_v26 }
 0x3c2   :  { %2517 = vmatpush1.bf16.msra.mxu1 %v4407_v38 }
 0x3c3   :  { %2518 = vmatprep.subr.bf16.mxu1 %v4410_v39 }
 0x3c6   :  { %2519 = vmatpush1.bf16.msra.mxu1 %v4419_v42 }
 0x3c7   :  { %2828 = vmatprep.subr.bf16.mxu1 %v3489_v27 }
 0x469   :  { %v2173_v62 = vpop.f32.mrb[28].mxu0  ;;  %v2214_v8 = vpop.f32.mrb[44].mxu1 }
 0x46a   :  { %v2221_v4 = vadd.f32 %v2173_v62, %v4717_v11  ;;  %v2223_v57 = vadd.f32 %v2214_v8, %v4718_v13  ;;  %v2175_v58 = vpop.f32.mrb[29].mxu0  ;;  %v2216_v15 = vpop.f32.mrb[45].mxu1 }
 0x46b   :  { %v2222_v56 = vadd.f32 %v2175_v58, %v4719_v31  ;;  %v2224_v44 = vadd.f32 %v2216_v15, %v4720_v17  ;;  %v2177_v27 = vpop.f32.mrb[30].mxu0  ;;  %v2218_v62 = vpop.f32.mrb[46].mxu1  ;;  %v3739_v31 = vmov 2  }
 0x46c   :  { %v3259_v11 = vmul.f32 -1.442695, %v2221_v4  ;;  %v2178_v50 = vpop.f32.mrb[31].mxu0  ;;  %v2219_v59 = vpop.f32.mrb[47].mxu1 }
 0x46d   :  { %v3260_v14 = vmul.f32 -1.442695, %v2222_v56  ;;  %v3261_v8 = vmul.f32 -1.442695, %v2224_v44  ;;  %v2250_v56 = vsel %vm80_vm1, 3, %v3739_v31  ;;  %v3506_v31 = vld [vmem:[#allocation10 + $0x38] sm:$0xff]  }
 0x46e   :  { %3555 = vpow2.f32 %v3259_v11  ;;  %vm2251_vm9 = vcmp.lt.s32.totalorder %v2250_v56, %v4265_v5  ;;  %v2908_v56 = vld [vmem:[%s4652_s6] sm:$0xff] }
 0x46f   :  { %3557 = vpow2.f32 %v3260_v14  ;;  %3029 = vperm.xlu1 %3396, %v2908_v56  }
 0x470   :  { %3559 = vpow2.f32 %v3261_v8 }
 0x471   :  { %3561 = vtanh.f32 %v2223_v57 }
 0x478   :  { %v3556_v13 = vpop.eup %3555 }
 0x479   :  { %v3558_v53 = vpop.eup %3557  ;;  %v2228_v61 = vadd.f32 1.0, %v3556_v13 }
 0x47a   :  { %v2234_v60 = vadd.f32 1.0, %v3558_v53  ;;  %v3560_v51 = vpop.eup %3559 }
 0x47b   :  { %3563 = vrcp.f32 %v2228_v61  ;;  %v3562_v12 = vpop.eup %3561  ;;  %v2241_v4 = vadd.f32 1.0, %v3560_v51  ;;  %v3741_v51 = vmov 0.0  }
 0x47c   :  { %3565 = vrcp.f32 %v2234_v60  ;;  %v3499_v60 = vld [vmem:[#allocation10] sm:$0xff]  }
 0x47d   :  { %3567 = vrcp.f32 %v2241_v4  ;;  %v3504_v4 = vld [vmem:[#allocation10 + $0x28] sm:$0xff]  }
 0x485   :  { %v3564_v7 = vpop.eup %3563 }
 0x486   :  { %v3566_v58 = vpop.eup %3565  ;;  %v2246_v15 = vmul.f32 %v3564_v7, %v3562_v12  ;;  %v3500_v12 = vld [vmem:[#allocation10 + $0x8] sm:$0xff]   ;;  %v3501_v7 = vld [vmem:[#allocation10 + $0x10] sm:$0xff]  }
 0x487   :  { %v2245_v50 = vmul.f32 %v3566_v58, %v4450_v55  ;;  %v3568_v61 = vpop.eup %3567  ;;  %v3502_v58 = vld [vmem:[#allocation10 + $0x18] sm:$0xff]  }
 0x489   :  { %v2247_v17 = vadd.f32 %v2246_v15, %v2245_v50  ;;  %v3503_v15 = vld [vmem:[#allocation10 + $0x20] sm:$0xff]   ;;  %v3505_v50 = vld [vmem:[#allocation10 + $0x30] sm:$0xff]  }
 0x48b   :  { %3569 = vtanh.f32 %v2247_v17  ;;  %v4525_v53 = vsel %vm2251_vm9, %v2247_v17, %v4450_v55 }
 0x495   :  { %v3570_v57 = vpop.eup %3569 }
 0x496   :  { %v2249_v44 = vmul.f32 %v3570_v57, %v3568_v61  ;;  %v4727_v61 = vld [vmem:[#allocation30_spill] sm:$0xff] }
 0x498   :  { %v4528_v27 = vsel %vm2251_vm9, %v2249_v44, %v4453_v46  ;;  %v4728_v44 = vld [vmem:[#allocation34_spill] sm:$0xff] }
 0x499   :  { %v2270_v62 = vpack.c.bf16 %v4528_v27, %v4528_v27 }
 0x49b   :  { %2496 = vmatmul.mubr.bf16.vlgmr.msra.gmra.mrb[32].mxu0 %v2270_v62  ;;  %2537 = vmatmul.mubr.bf16.vlgmr.msra.gmra.mrb[48].mxu1 %v2270_v62 }
 0x49c   :  { %2788 = vmatpush1.bf16.msra.mxu0 %v4358_v63  ;;  %2829 = vmatpush1.bf16.msra.mxu1 %v4475_v16 }
 0x49d   :  { %2789 = vmatprep.subr.bf16.mxu0 %v4362_v29  ;;  %2830 = vmatprep.subr.bf16.mxu1 %v4478_v3 }
 0x49e   :  { %2819 = vmatprep.mubr.bf16.mxu0 %v4702_v2  ;;  %2860 = vmatprep.mubr.bf16.mxu1 %v4702_v2 }
 0x4a0   :  { %2790 = vmatpush1.bf16.msra.mxu0 %v4364_v30  ;;  %2831 = vmatpush1.bf16.msra.mxu1 %v4480_v47  ;;  %v4721_v30 = vld [vmem:[#allocation26_spill] sm:$0xff] }
 0x4a1   :  { %2791 = vmatprep.subr.bf16.mxu0 %v4368_v32  ;;  %2832 = vmatprep.subr.bf16.mxu1 %v4484_v6  ;;  %v3740_v6 = vmov 1  }
 0x4a4   :  { %2792 = vmatpush1.bf16.msra.mxu0 %v4370_v33  ;;  %2833 = vmatpush1.bf16.msra.mxu1 %v4486_v0  ;;  %v4722_v33 = vsel %vm4176_vm3, %v4208_v45, %v4139_v1  ;;  %v2574_v0 = vsel %vm80_vm1, 4, %v3740_v6 }
 0x4a5   :  { %2793 = vmatprep.subr.bf16.mxu0 %v4374_v34  ;;  %2834 = vmatprep.subr.bf16.mxu1 %v4490_v9  ;;  %vm2575_vm10 = vcmp.lt.s32.totalorder %v2574_v0, %v4265_v5 }
 0x4a8   :  { %2794 = vmatpush1.bf16.msra.mxu0 %v4376_v35  ;;  %2835 = vmatpush1.bf16.msra.mxu1 %v4492_v54 }
 0x4a9   :  { %2795 = vmatprep.subr.bf16.mxu0 %v4378_v36  ;;  %2836 = vmatprep.subr.bf16.mxu1 %v4383_v19 }
 0x4ac   :  { %2796 = vmatpush1.bf16.msra.mxu0 %v4386_v20  ;;  %2837 = vmatpush1.bf16.msra.mxu1 %v4381_v18  ;;  %v4723_v18 = vsel %vm4058_vm2, %v4707_v23, %v4706_v22  ;;  %v4724_v20 = vld [vmem:[#allocation32_spill] sm:$0xff] }
 0x4ad   :  { %2797 = vmatprep.subr.bf16.mxu0 %v4392_v24  ;;  %2838 = vmatprep.subr.bf16.mxu1 %v4388_v21  ;;  %v4725_v21 = vld [vmem:[#allocation28_spill] sm:$0xff] }
 0x4ae   :  { %v4726_v24 = vsel %vm4182_vm4, %v4724_v20, %v4725_v21 }
 0x4b0   :  { %2798 = vmatpush1.bf16.msra.mxu0 %v4401_v28  ;;  %2839 = vmatpush1.bf16.msra.mxu1 %v4395_v25 }
 0x4b1   :  { %2799 = vmatprep.subr.bf16.mxu0 %v4404_v37  ;;  %2840 = vmatprep.subr.bf16.mxu1 %v4398_v26 }
 0x4b4   :  { %2800 = vmatpush1.bf16.msra.mxu0 %v4413_v40  ;;  %2841 = vmatpush1.bf16.msra.mxu1 %v4407_v38 }
 0x4b5   :  { %2801 = vmatprep.subr.bf16.mxu0 %v4416_v41  ;;  %2842 = vmatprep.subr.bf16.mxu1 %v4410_v39 }
 0x4b8   :  { %2802 = vmatpush1.bf16.msra.mxu0 %v4423_v43  ;;  %2843 = vmatpush1.bf16.msra.mxu1 %v4419_v42 }
 0x4b9   :  { %3355 = vmatprep.subr.bf16.mxu0 %v3741_v51 }
 0x4ee   :  { %v3030_v0 = vpop.permute.xlu1 %3029 }
 0x4ef   :  { %vm3031_vm14 = vcmp.eq.s32.totalorder %v4029_v49, %v3030_v0 }
 0x56e   :  { %v2497_v63 = vpop.f32.mrb[32].mxu0  ;;  %v2538_v29 = vpop.f32.mrb[48].mxu1 }
 0x56f   :  { %v2545_v32 = vadd.f32 %v2497_v63, %v4721_v30  ;;  %v2547_v34 = vadd.f32 %v2538_v29, %v4722_v33  ;;  %v2499_v35 = vpop.f32.mrb[33].mxu0  ;;  %v2540_v36 = vpop.f32.mrb[49].mxu1  ;;  %v4732_v33 = vld [vmem:[#allocation27_spill] sm:$0xff] }
 0x570   :  { %v2546_v19 = vadd.f32 %v2499_v35, %v4723_v18  ;;  %v2548_v25 = vadd.f32 %v2540_v36, %v4726_v24  ;;  %v2501_v26 = vpop.f32.mrb[34].mxu0  ;;  %v2542_v28 = vpop.f32.mrb[50].mxu1  ;;  %v4734_v36 = vld [vmem:[#allocation36_spill] sm:$0xff]  ;;  %v4735_v18 = vld [vmem:[#allocation35_spill] sm:$0xff] }
 0x571   :  { %v3294_v37 = vmul.f32 -1.442695, %v2545_v32  ;;  %v2502_v38 = vpop.f32.mrb[35].mxu0  ;;  %v2543_v1 = vpop.f32.mrb[51].mxu1  ;;  %v4731_v32 = vld [vmem:[#allocation29_spill] sm:$0xff] }
 0x572   :  { %v3295_v45 = vmul.f32 -1.442695, %v2546_v19  ;;  %v3296_v39 = vmul.f32 -1.442695, %v2548_v25  ;;  %v4736_v19 = vsel %vm4182_vm4, %v4734_v36, %v4735_v18 }
 0x573   :  { %3571 = vpow2.f32 %v3294_v37 }
 0x574   :  { %3573 = vpow2.f32 %v3295_v45 }
 0x575   :  { %3575 = vpow2.f32 %v3296_v39 }
 0x576   :  { %3577 = vtanh.f32 %v2547_v34  ;;  %v4733_v34 = vsel %vm4058_vm2, %v4731_v32, %v4732_v33 }
 0x57d   :  { %v3572_v40 = vpop.eup %3571 }
 0x57e   :  { %v3574_v41 = vpop.eup %3573  ;;  %v2552_v42 = vadd.f32 1.0, %v3572_v40 }
 0x57f   :  { %v2558_v22 = vadd.f32 1.0, %v3574_v41  ;;  %v3576_v23 = vpop.eup %3575 }
 0x580   :  { %3579 = vrcp.f32 %v2552_v42  ;;  %v3578_v43 = vpop.eup %3577  ;;  %v2565_v3 = vadd.f32 1.0, %v3576_v23 }
 0x581   :  { %3581 = vrcp.f32 %v2558_v22 }
 0x582   :  { %3583 = vrcp.f32 %v2565_v3 }
 0x58a   :  { %v3580_v55 = vpop.eup %3579 }
 0x58b   :  { %v3582_v46 = vpop.eup %3581  ;;  %v2570_v16 = vmul.f32 %v3580_v55, %v3578_v43 }
 0x58c   :  { %v2569_v47 = vmul.f32 %v3582_v46, %v4525_v53  ;;  %v3584_v11 = vpop.eup %3583  ;;  %v2898_v46 = vsel %vm80_vm1, 5, %v4702_v2 }
 0x58d   :  { %vm2899_vm12 = vcmp.lt.s32.totalorder %v2898_v46, %v4265_v5 }
 0x58e   :  { %v2571_v9 = vadd.f32 %v2570_v16, %v2569_v47 }
 0x590   :  { %3585 = vtanh.f32 %v2571_v9  ;;  %v4585_v54 = vsel %vm2575_vm10, %v2571_v9, %v4525_v53 }
 0x59a   :  { %v3586_v59 = vpop.eup %3585 }
 0x59b   :  { %v2573_v14 = vmul.f32 %v3586_v59, %v3584_v11 }
 0x59d   :  { %v4588_v8 = vsel %vm2575_vm10, %v2573_v14, %v4528_v27  ;;  %v4729_v27 = vld [vmem:[#allocation33_spill] sm:$0xff] }
 0x59e   :  { %v2594_v13 = vpack.c.bf16 %v4588_v8, %v4588_v8  ;;  %v4730_v62 = vsel %vm4176_vm3, %v4728_v44, %v4729_v27 }
 0x5a0   :  { %2820 = vmatmul.mubr.bf16.vlgmr.msra.gmra.mrb[36].mxu0 %v2594_v13  ;;  %2861 = vmatmul.mubr.bf16.vlgmr.msra.gmra.mrb[52].mxu1 %v2594_v13 }
 0x5a1   :  { %3356 = vmatpush3.bf16.msra.mxu0 %v3499_v60  ;;  %3371 = vmatprep.mubr.msk.bf16.mxu0 %vm3742_vm11, %v3741_v51 }
 0x5a2   :  { %3357 = vmatprep.subr.bf16.mxu0 %v3741_v51 }
 0x5a5   :  { %3358 = vmatpush3.bf16.msra.mxu0 %v3500_v12 }
 0x5a6   :  { %3359 = vmatprep.subr.bf16.mxu0 %v3741_v51 }
 0x5a9   :  { %3360 = vmatpush3.bf16.msra.mxu0 %v3501_v7 }
 0x5aa   :  { %3361 = vmatprep.subr.bf16.mxu0 %v3741_v51 }
 0x5ad   :  { %3362 = vmatpush3.bf16.msra.mxu0 %v3502_v58 }
 0x5ae   :  { %3363 = vmatprep.subr.bf16.mxu0 %v3741_v51 }
 0x5b1   :  { %3364 = vmatpush3.bf16.msra.mxu0 %v3503_v15 }
 0x5b2   :  { %3365 = vmatprep.subr.bf16.mxu0 %v3741_v51 }
 0x5b5   :  { %3366 = vmatpush3.bf16.msra.mxu0 %v3504_v4 }
 0x5b6   :  { %3367 = vmatprep.subr.bf16.mxu0 %v3741_v51 }
 0x5b9   :  { %3368 = vmatpush3.bf16.msra.mxu0 %v3505_v50 }
 0x5ba   :  { %3369 = vmatprep.subr.bf16.mxu0 %v3741_v51 }
 0x5bd   :  { %3370 = vmatpush3.bf16.msra.mxu0 %v3506_v31 }
 0x673   :  { %v2821_v17 = vpop.f32.mrb[36].mxu0  ;;  %v2862_v53 = vpop.f32.mrb[52].mxu1 }
 0x674   :  { %v2869_v57 = vadd.f32 %v2821_v17, %v4727_v61  ;;  %v2871_v63 = vadd.f32 %v2862_v53, %v4730_v62  ;;  %v2823_v29 = vpop.f32.mrb[37].mxu0  ;;  %v2864_v30 = vpop.f32.mrb[53].mxu1  ;;  %v3040_v53 = vld [vmem:[%s4653_s7] sm:$0xff] }
 0x675   :  { %v2870_v35 = vadd.f32 %v2823_v29, %v4733_v34  ;;  %v2872_v20 = vadd.f32 %v2864_v30, %v4736_v19  ;;  %v2825_v21 = vpop.f32.mrb[38].mxu0  ;;  %v2866_v48 = vpop.f32.mrb[54].mxu1 }
 0x676   :  { %v3329_v24 = vmul.f32 -1.442695, %v2869_v57  ;;  %v2826_v25 = vpop.f32.mrb[39].mxu0  ;;  %v2867_v26 = vpop.f32.mrb[55].mxu1 }
 0x677   :  { %v3330_v28 = vmul.f32 -1.442695, %v2870_v35  ;;  %v3331_v37 = vmul.f32 -1.442695, %v2872_v20 }
 0x678   :  { %3587 = vpow2.f32 %v3329_v24 }
 0x679   :  { %3589 = vpow2.f32 %v3330_v28 }
 0x67a   :  { %3591 = vpow2.f32 %v3331_v37 }
 0x67b   :  { %3593 = vtanh.f32 %v2871_v63 }
 0x682   :  { %v3588_v10 = vpop.eup %3587 }
 0x683   :  { %v3590_v38 = vpop.eup %3589  ;;  %v2876_v1 = vadd.f32 1.0, %v3588_v10 }
 0x684   :  { %v2882_v45 = vadd.f32 1.0, %v3590_v38  ;;  %v3592_v52 = vpop.eup %3591 }
 0x685   :  { %3595 = vrcp.f32 %v2876_v1  ;;  %v3594_v39 = vpop.eup %3593  ;;  %v2889_v22 = vadd.f32 1.0, %v3592_v52 }
 0x686   :  { %3597 = vrcp.f32 %v2882_v45 }
 0x687   :  { %3599 = vrcp.f32 %v2889_v22 }
 0x68f   :  { %v3596_v40 = vpop.eup %3595 }
 0x690   :  { %v3598_v41 = vpop.eup %3597  ;;  %v2894_v42 = vmul.f32 %v3596_v40, %v3594_v39 }
 0x691   :  { %v2893_v23 = vmul.f32 %v3598_v41, %v4585_v54  ;;  %v3600_v55 = vpop.eup %3599 }
 0x693   :  { %v2895_v43 = vadd.f32 %v2894_v42, %v2893_v23 }
 0x695   :  { %3601 = vtanh.f32 %v2895_v43 }
 0x69f   :  { %v3602_v16 = vpop.eup %3601 }
 0x6a0   :  { %v2897_v3 = vmul.f32 %v3602_v16, %v3600_v55 }
 0x6a2   :  { %v2903_v47 = vsel %vm2899_vm12, %v2897_v3, %v4588_v8 }
 0x6a3   :  { %v2907_v6 = vpack.c.bf16 %v2903_v47, %v2903_v47  ;;  %2906 = vst [vmem:[#allocation11] sm:$0xff] %v2903_v47 }
 0x6a5   :  { %3372 = vmatmul.mubr.bf16.vlgmr.msra.gmra.mrb[40].mxu0 %v2907_v6 }
 0x778   :  { %v3007_v9 = vpop.f32.mrb[40].mxu0 }
 0x779   :  { %v3014_v54 = vsel %vm3013_vm13, %v3007_v9, -1e+30  ;;  %v3373_v11 = vpop.f32.mrb[41].mxu0 }
 0x77a   :  { %3015 = vmax.xlane.f32.xlu0 %v3014_v54  ;;  %v3010_v59 = vpop.f32.mrb[42].mxu0  ;;  %v3032_v14 = vsel %vm3031_vm14, %v3014_v54, 0.0 }
 0x77b   :  { %v3374_v2 = vpop.f32.mrb[43].mxu0 }
 0x77e   :  { %3033 = vadd.xlane.f32.xlu0 %v3032_v14 }
 0x807   :  { %v3016_v13 = vpop.xlane.xlu0 %3015 }
 0x808   :  { %v3017_v5 = vmax.f32 %v3016_v13, -1e+30 }
 0x80a   :  { %v3022_v60 = vsub.f32 %v3014_v54, %v3017_v5  ;;  %v3018_v12 = vsub.f32 -1e+30, %v3017_v5 }
 0x80b   :  { %v3034_v17 = vpop.xlane.xlu0 %3033 }
 0x80c   :  { %v3023_v8 = vmul.f32 1.442695, %v3022_v60  ;;  %v3019_v7 = vmul.f32 1.442695, %v3018_v12 }
 0x80e   :  { %3603 = vpow2.f32 %v3023_v8 }
 0x80f   :  { %3605 = vpow2.f32 %v3019_v7 }
 0x818   :  { %v3604_v51 = vpop.eup %3603 }
 0x819   :  { %3025 = vadd.xlane.f32.xlu1 %v3604_v51  ;;  %v3606_v58 = vpop.eup %3605 }
 0x81a   :  { %v3021_v15 = vmul.f32 0.0, %v3606_v58 }
 0x8a6   :  { %v3026_v4 = vpop.xlane.xlu1 %3025 }
 0x8a7   :  { %v3027_v50 = vadd.f32 %v3026_v4, %v3021_v15 }
 0x8a9   :  { %3607 = vlog2.f32 %v3027_v50 }
 0x8b3   :  { %v3608_v49 = vpop.eup %3607 }
 0x8b4   :  { %v3037_v31 = vmul.f32 0.6931472, %v3608_v49 }
 0x8b6   :  { %v3038_v56 = vadd.f32 %v3037_v31, %v3017_v5 }
 0x8b8   :  { %v3039_v61 = vsub.f32 %v3038_v56, %v3034_v17 }
 0x8ba   :  { %v3041_v57 = vmul.f32 %v3040_v53, %v3039_v61 }
 0x8bc   :  { %v3043_v44 = vsel %vm3042_vm15, %v3041_v57, 0.0 }
 0x8bd   :  { %3044 = vadd.xlane.f32.xlu0 %v3043_v44 }
 0x8be   :  { %3686 = shalt.err (!%p3683_p0)
}
 0x8bf   :  { %s3687_s29 = scalar_lea.hbm %s4654_s8, 128 }
 0x8c0   :  { %p3688_p1 = scmp.ne.s32.totalorder %s4654_s8, %s3687_s29  ;;  %p3691_p2 = scmp.lt.u32.totalorder %s3687_s29, %s4654_s8 }
 0x8c2   :  { %p3693_p3 = pnand %p3691_p2, %p3688_p1 }
 0x8c4   :  { %3696 = shalt.err (!%p3693_p3)
}
 0x8c5   :  { %3065 = dma.vmem_to_hbm [thread:$0]  %s3063_s24, 128, %s4654_s8, [#allocation7]  }
 0x8c6   :  { %s3744_s3 = smov [#allocation12]  }
 0x8c7   :  { %s3072_s1 = sshll.u32 %s3744_s3, 4  ;;  %s3073_s1 = int_to_ptr.vmem [resolvable:$true] %s3072_s1 }
 0x8c8   :  { %s3697_s13 = scalar_lea.vmem %s3073_s1, 128  ;;  %p3702_p5 = scmp.lt.s32.totalorder %s3073_s1, %s3073_s1 }
 0x8c9   :  { %p3698_p4 = scmp.ne.s32.totalorder %s3073_s1, %s3697_s13  ;;  %p3703_p6 = scmp.lt.s32.totalorder %s3697_s13, %s3697_s13 }
 0x8cb   :  { %p3704_p7 = por %p3703_p6, %p3702_p5 }
 0x8cd   :  { %p3705_p8 = pnand %p3704_p7, %p3698_p4 }
 0x94a   :  { %v3045_v27 = vpop.xlane.xlu0 %3044 }
 0x94b   :  { %v3046_v62 = vrot.slane %v3045_v27, 4 }
 0x94d   :  { %v3047_v63 = vadd.f32 %v3046_v62, %v3045_v27 }
 0x94f   :  { %v3048_v29 = vrot.slane %v3047_v63, 2 }
 0x951   :  { %v3049_v30 = vadd.f32 %v3048_v29, %v3047_v63 }
 0x953   :  { %v3050_v32 = vrot.slane %v3049_v30, 1 }
 0x955   :  { %v3051_v33 = vadd.f32 %v3050_v32, %v3049_v30 }
 0x957   :  { %3375 = vpush %v3051_v33 }
 0x988   :  { %s3376_s10 = spop %3375 }
 0x989   :  { %v3053_v34 = vstv %s3376_s10 }
 0x98a   :  { %3055 = vst [vmem:[#allocation12] sm:$0xff] %v3053_v34 }
 0x98b   :  { %3708 = shalt.err (!%p3705_p8)
}
 0x98c   :  { %s3709_s15 = scalar_lea.hbm %s4655_s9, 128 }
 0x98d   :  { %p3710_p9 = scmp.ne.s32.totalorder %s4655_s9, %s3709_s15  ;;  %p3713_p10 = scmp.lt.u32.totalorder %s3709_s15, %s4655_s9 }
 0x98f   :  { %p3715_p11 = pnand %p3713_p10, %p3710_p9 }
 0x991   :  { %3718 = shalt.err (!%p3715_p11)
}
 0x992   :  { %3075 = dma.vmem_to_hbm [thread:$0]  %s3073_s1, 128, %s4655_s9, [#allocation13]  }
 0x993   :  { %3723 = dma.done.wait [#allocation7], 128  }
 0x994   :  { %3724 = vsyncadd [#allocation7], 4294967168 }
 0x995   :  { %3725 = dma.done.wait [#allocation13], 128  }
 0x996   :  { %3726 = vsyncadd [#allocation13], 4294967168 }
 0x997   :  { %3082 = vsyncpa [#allocation6], 1 }
 0x998   :  { %3083 = vsyncpa [#allocation9], 1 }
 0x999   :  { %3084 = vsyncpa [#allocation7], 1 }
 0x99a   :  { %3085 = vsyncpa [#allocation13], 1 }

</bundles_post_ra>
